<compile_context>
chip_gen: v7x
topology: tpu7x:2x2x1
jax: 0.10.0
libtpu: 0.0.40
codegen_flags: <defaults>
</compile_context>

<pallas_src>
import functools

import jax
import jax.numpy as jnp
from jax.experimental import pallas as pl
from jax.experimental.pallas import tpu as pltpu

LANE = 128          # lane width; node feature width H*C is kept at 128
TM = 128            # destination-node row tile (output rows per agg tile)
TE = 512            # edges per aggregation block (reduction tile)
BN_EPS = 1e-5
NEG_SLOPE = 0.2     # GATConv LeakyReLU negative slope (PyG default)


def _round_up(n, m):
    return ((n + m - 1) // m) * m


# -----------------------------------------------------------------------------
# Kernel 1: node projection  xp = x @ W   (row-tiled, weight VMEM-resident,
# bf16 output for the sparse aggregation MXU matmuls)
# -----------------------------------------------------------------------------
def _proj_kernel(x_ref, w_ref, o_ref):
    o_ref[...] = jnp.dot(x_ref[...], w_ref[...],
                         preferred_element_type=jnp.float32).astype(o_ref.dtype)


def gat_project(x, w, tm=TM):
    n_pad, din = x.shape
    hc = w.shape[1]
    return pl.pallas_call(
        _proj_kernel,
        out_shape=jax.ShapeDtypeStruct((n_pad, hc), jnp.bfloat16),
        grid_spec=pltpu.PrefetchScalarGridSpec(
            num_scalar_prefetch=0,
            grid=(n_pad // tm,),
            in_specs=[pl.BlockSpec((tm, din), lambda i: (i, 0)),
                      pl.BlockSpec((din, hc), lambda i: (0, 0))],   # resident
            out_specs=pl.BlockSpec((tm, hc), lambda i: (i, 0))),
        compiler_params=pltpu.CompilerParams(
            dimension_semantics=("parallel",)),
    )(x, w)


# -----------------------------------------------------------------------------
# Kernel 2: sparse aggregation with fused bias/BatchNorm/ELU epilogue.
#
# Edges are pre-sorted by destination and grouped per destination row-tile
# (each group zero-padded to a multiple of tE).  brt (scalar prefetch, SMEM)
# maps every edge block to its destination row-tile; the output BlockSpec uses
# it, so blocks of the same tile revisit the same resident output buffer.
# Per block:   acc(tm, hc) += onehot(tm, tE) @ wfeat(tE, hc)      (one MXU op)
# where onehot[r, e] = (local_dst[e] == r) and wfeat[e] = alpha_norm * xp[src].
# -----------------------------------------------------------------------------
def _sparse_agg_kernel(brt_ref, dl_ref, wf_ref, scale_ref, shift_ref,
                       o_ref, acc_ref, *, tm, apply_elu):
    b = pl.program_id(0)
    nb = pl.num_programs(0)
    tile = brt_ref[b]
    prev_tile = brt_ref[jnp.maximum(b - 1, 0)]
    next_tile = brt_ref[jnp.minimum(b + 1, nb - 1)]
    is_first = jnp.logical_or(b == 0, prev_tile != tile)
    is_last = jnp.logical_or(b == nb - 1, next_tile != tile)

    @pl.when(is_first)
    def _():
        acc_ref[...] = jnp.zeros_like(acc_ref)

    te = dl_ref.shape[1]
    dl = dl_ref[0:1, :]                                       # (1, tE) int32
    rows = jax.lax.broadcasted_iota(jnp.int32, (tm, te), 0)   # (tm, tE)
    onehot = (rows == dl).astype(wf_ref.dtype)                # exact 0/1 bf16
    acc_ref[...] += jnp.dot(onehot, wf_ref[...],
                            preferred_element_type=jnp.float32)

    @pl.when(is_last)
    def _():
        y = acc_ref[...] * scale_ref[...] + shift_ref[...]
        if apply_elu:
            y = jnp.where(y > 0.0, y, jnp.exp(jnp.minimum(y, 0.0)) - 1.0)
        o_ref[...] = y.astype(o_ref.dtype)


def gat_aggregate_sparse(brt, dl2, wfeat, scale, shift, *, n_pad, apply_elu,
                         out_dtype, tm=TM, te=TE):
    hc = wfeat.shape[1]
    num_blocks = wfeat.shape[0] // te
    kern = functools.partial(_sparse_agg_kernel, tm=tm, apply_elu=apply_elu)
    return pl.pallas_call(
        kern,
        out_shape=jax.ShapeDtypeStruct((n_pad, hc), out_dtype),
        grid_spec=pltpu.PrefetchScalarGridSpec(
            num_scalar_prefetch=1,                       # brt -> SMEM
            grid=(num_blocks,),
            in_specs=[pl.BlockSpec((8, te), lambda b, brt_ref: (0, b)),
                      pl.BlockSpec((te, hc), lambda b, brt_ref: (b, 0)),
                      pl.BlockSpec((1, hc), lambda b, brt_ref: (0, 0)),
                      pl.BlockSpec((1, hc), lambda b, brt_ref: (0, 0))],
            out_specs=pl.BlockSpec((tm, hc),
                                   lambda b, brt_ref: (brt_ref[b], 0)),
            scratch_shapes=[pltpu.VMEM((tm, hc), jnp.float32)]),
        compiler_params=pltpu.CompilerParams(
            dimension_semantics=("arbitrary",)),
    )(brt, dl2, wfeat, scale, shift)


# -----------------------------------------------------------------------------
# Full EdgeGAT forward (inference)
# -----------------------------------------------------------------------------
def edgegat_forward(layers, w_edge_all, x, edge_index, edge_attr,
                    tm=TM, te=TE):
    """x: (N, Cin) f32, edge_index: (2, E) i32 (row0=src, row1=dst),
    edge_attr: (E, De) f32.  Dropout layers are identity (eval mode)."""
    n = x.shape[0]
    e = edge_index.shape[1]
    de = edge_attr.shape[1]
    src, dst = edge_index[0], edge_index[1]

    # --- add self-loops (PyG GATConv: add_self_loops=True, fill_value='mean').
    # The input graph is assumed to contain no pre-existing self-loops.
    cnt = jnp.zeros((n,), jnp.float32).at[dst].add(1.0)
    asum = jnp.zeros((n, de), jnp.float32).at[dst].add(edge_attr)
    loop_attr = asum / jnp.maximum(cnt, 1.0)[:, None]
    loop_idx = jnp.arange(n, dtype=src.dtype)
    src = jnp.concatenate([src, loop_idx])
    dst = jnp.concatenate([dst, loop_idx])
    edge_attr = jnp.concatenate([edge_attr, loop_attr], axis=0)
    e_tot = e + n

    n_pad = _round_up(n, tm)
    n_tiles = n_pad // tm

    # --- sort edges by destination, group per destination row-tile, pad each
    #     group to a multiple of tE (CSR-style slot layout; graph-level, shared
    #     by all three layers).
    order = jnp.argsort(dst)
    src_s = src[order]
    dst_s = dst[order]

    tile_of_edge = dst_s // tm
    counts = jnp.zeros((n_tiles,), jnp.int32).at[tile_of_edge].add(1)
    pcount = ((counts + te - 1) // te) * te            # per-group padded counts
    gend = jnp.cumsum(pcount)
    gstart = gend - pcount
    cend = jnp.cumsum(counts)
    cstart = cend - counts

    e_slots = _round_up(e_tot, te) + n_tiles * te      # static upper bound
    num_blocks = e_slots // te

    rank = jnp.arange(e_tot, dtype=jnp.int32) - cstart[tile_of_edge]
    slot = gstart[tile_of_edge] + rank                 # unique slot per edge

    src_slot = jnp.zeros((e_slots,), jnp.int32).at[slot].set(src_s)
    dst_local = jnp.zeros((e_slots,), jnp.int32).at[slot].set(dst_s % tm)
    dl2 = jnp.broadcast_to(dst_local[None, :], (8, e_slots))  # sublane-tiled

    block_first = jnp.arange(num_blocks, dtype=jnp.int32) * te
    brt = jnp.searchsorted(gend, block_first, side="right").astype(jnp.int32)
    brt = jnp.minimum(brt, dst_s[-1] // tm)   # map trailing pad blocks to the
                                              # last real tile (zero weights)

    # --- per-edge attention contribution from edge features, all layers at
    #     once (tiny (E, De) x (De, sum_heads) matmul -> XLA glue).
    e_att_all = (edge_attr @ w_edge_all).astype(jnp.float32)

    h = jnp.pad(x, ((0, n_pad - n), (0, 0)))
    col = 0
    n_layers = len(layers)
    for li, lp in enumerate(layers):
        heads, cph = lp["heads"], lp["cph"]
        e_att = e_att_all[:, col:col + heads]
        col += heads

        # (1) node projection (Pallas, lane-dense bf16 output)
        xp = gat_project(h, lp["w"], tm=tm)            # (n_pad, H*C) bf16

        # attention node-terms via exact fold  x @ (W @ att)  (XLA, 2H cols)
        att = h.astype(jnp.float32) @ lp["watt"]        # (n_pad, 2H)
        a_src, a_dst = att[:, :heads], att[:, heads:]

        # (2) per-destination softmax over incoming edges (XLA glue),
        #     normalized at the edge level (no inv stream into the kernel).
        logit = a_src[src] + a_dst[dst] + e_att                     # (E, H)
        logit = jnp.where(logit >= 0.0, logit, NEG_SLOPE * logit)   # LeakyReLU
        mx = jnp.full((n, heads), -jnp.inf, jnp.float32).at[dst].max(logit)
        s = jnp.exp(logit - mx[dst])
        denom = jnp.zeros((n, heads), jnp.float32).at[dst].add(s)
        w_edge = s / denom[dst]                                     # (E, H)

        # scatter weights into slots, gather source features, weight per edge
        # TODO(synk): move the xp[src] row gather into the aggregation kernel
        # (manual DMA per edge block) to avoid materializing the gathered
        # (E_slots, H*C) array for very large edge counts.
        w_slot = jnp.zeros((e_slots, heads),
                           jnp.float32).at[slot].set(w_edge[order])
        xp_gather = jnp.take(xp, src_slot, axis=0).astype(jnp.float32)
        wfeat = (jnp.repeat(w_slot, cph, axis=1) * xp_gather).astype(jnp.bfloat16)

        # (3) sparse aggregation with fused bias/BN/ELU epilogue (Pallas)
        out_dtype = jnp.float32 if li == n_layers - 1 else jnp.bfloat16
        h = gat_aggregate_sparse(brt, dl2, wfeat, lp["scale"], lp["shift"],
                                 n_pad=n_pad, apply_elu=lp["apply_elu"],
                                 out_dtype=out_dtype, tm=tm, te=te)

    last = layers[-1]
    out = h[:n].reshape(n, last["heads"], last["cph"])[:, :, :last["out_c"]]
    return out.reshape(n, last["heads"] * last["out_c"])


# -----------------------------------------------------------------------------
# Parameters (PyTorch-like raw params) and host-side folding / padding
# -----------------------------------------------------------------------------
def init_params(key, in_channels, hidden, out_channels, edge_dim, heads=4):
    dims = [(in_channels, heads, hidden),          # conv1
            (hidden * heads, heads, hidden),       # conv2
            (hidden * heads, 1, out_channels)]     # conv3 (heads=1)
    s = 0.1
    params = []
    for li, (din, hh, cc) in enumerate(dims):
        key, *ks = jax.random.split(key, 7)

        def w(k, shp):
            return (s * jax.random.normal(k, shp)).astype(jnp.float32)

        p = {"w": w(ks[0], (din, hh * cc)),            # shared lin_src/lin_dst
             "att_src": w(ks[1], (hh, cc)),
             "att_dst": w(ks[2], (hh, cc)),
             "att_edge": w(ks[3], (hh, cc)),
             "w_edge": w(ks[4], (edge_dim, hh * cc)),  # lin_edge (no bias)
             "bias": w(ks[5], (hh * cc,))}
        if li < 2:   # BatchNorm1d(hidden*heads), inference running stats
            f = hh * cc
            p.update(bn_g=jnp.full((f,), 1.1, jnp.float32),
                     bn_b=jnp.full((f,), 0.05, jnp.float32),
                     bn_m=jnp.full((f,), 0.02, jnp.float32),
                     bn_v=jnp.full((f,), 0.9, jnp.float32))
        params.append(p)
    return params


def _block_diag_att(att):
    """(H, C) attention vector -> (H*C, H) so that xp @ result equals
    (xp.view(N, H, C) * att).sum(-1)."""
    hh, cc = att.shape
    eye = jnp.eye(hh, dtype=att.dtype)
    return (att[:, :, None] * eye[:, None, :]).reshape(hh * cc, hh)


def prepare_layers(params):
    """Fold bias + inference BatchNorm into scale/shift, fold W @ att for the
    node attention terms, and pad the final layer's channels to a lane
    multiple.  Layers after the first store W in bf16 (inputs are bf16)."""
    layers, we_cols = [], []
    n_layers = len(params)
    for li, p in enumerate(params):
        hh, cc = p["att_src"].shape
        hc = hh * cc
        is_last = li == n_layers - 1
        if is_last and hc % LANE != 0:
            c_pad = _round_up(hc, LANE) // hh
            pad = c_pad - cc
            din = p["w"].shape[0]
            w = jnp.pad(p["w"].reshape(din, hh, cc),
                        ((0, 0), (0, 0), (0, pad))).reshape(din, hh * c_pad)
            att_src = jnp.pad(p["att_src"], ((0, 0), (0, pad)))
            att_dst = jnp.pad(p["att_dst"], ((0, 0), (0, pad)))
            bias = jnp.pad(p["bias"].reshape(hh, cc),
                           ((0, 0), (0, pad))).reshape(hh * c_pad)
        else:
            assert hc % LANE == 0, (
                "hidden_channels*heads must be a multiple of 128 for "
                "lane-dense tiling.")
            c_pad = cc
            w, att_src, att_dst, bias = (p["w"], p["att_src"], p["att_dst"],
                                         p["bias"])

        hcp = hh * c_pad
        attw = jnp.concatenate([_block_diag_att(att_src),
                                _block_diag_att(att_dst)], axis=1)  # (HCp, 2H)
        watt = (w @ attw).astype(jnp.float32)                       # (Din, 2H)
        we_cols.append(p["w_edge"] @ _block_diag_att(p["att_edge"]))  # (De, H)

        if "bn_g" in p:     # fold BatchNorm (inference) + conv bias
            sc = p["bn_g"] * jax.lax.rsqrt(p["bn_v"] + BN_EPS)
            scale = sc
            shift = p["bn_b"] - p["bn_m"] * sc + bias * sc
            apply_elu = True
        else:
            scale = jnp.ones((hcp,), jnp.float32)
            shift = bias
            apply_elu = False

        w_store = w.astype(jnp.float32 if li == 0 else jnp.bfloat16)
        layers.append(dict(w=w_store, watt=watt,
                           scale=scale.reshape(1, hcp).astype(jnp.float32),
                           shift=shift.reshape(1, hcp).astype(jnp.float32),
                           heads=hh, cph=c_pad, out_c=cc,
                           apply_elu=apply_elu))
    return layers, jnp.concatenate(we_cols, axis=1)


if __name__ == "__main__":
    N, E = 200, 600
    IN_C, HID, HEADS, OUT_C, EDGE_D = 16, 32, 4, 8, 8   # HID*HEADS = 128

    key = jax.random.PRNGKey(0)
    k_x, k_src, k_off, k_ea, k_p = jax.random.split(key, 5)

    x = jax.random.normal(k_x, (N, IN_C), jnp.float32)
    src = jax.random.randint(k_src, (E,), 0, N, dtype=jnp.int32)
    off = jax.random.randint(k_off, (E,), 1, N, dtype=jnp.int32)
    dst = ((src + off) % N).astype(jnp.int32)           # no self-loops
    edge_index = jnp.stack([src, dst], axis=0)          # (2, E): row0=src, row1=dst
    edge_attr = jax.random.normal(k_ea, (E, EDGE_D), jnp.float32)

    params = init_params(k_p, IN_C, HID, OUT_C, EDGE_D, heads=HEADS)
    layers, w_edge_all = prepare_layers(params)

    fwd = jax.jit(lambda xx, ei, ea: edgegat_forward(layers, w_edge_all,
                                                     xx, ei, ea))
    out = fwd(x, edge_index, edge_attr)
    out = jax.block_until_ready(out)
    assert out.shape == (N, OUT_C)
    assert bool(jnp.all(jnp.isfinite(out)))
    print("KERNEL_OK")
</pallas_src>

<mosaic_0001>
module attributes {stable_mosaic.version = 11 : i64} {
  func.func private @main(%arg0: i32) attributes {dimension_semantics = [#tpu.dimension_semantics<core_parallel>], iteration_bounds = array<i64: 2>, tpu.core_type = #tpu.core_type<sc_scalar_subcore>, window_params = []} {
    return
  }
}

module attributes {stable_mosaic.version = 11 : i64} {
  func.func private @main(%arg0: i32) attributes {dimension_semantics = [#tpu.dimension_semantics<core_parallel>], iteration_bounds = array<i64: 2>, tpu.core_type = #tpu.core_type<sc_scalar_subcore>, window_params = []} {
    return
  }
}

module attributes {stable_mosaic.version = 11 : i64} {
  func.func @_proj_kernel(%arg0: i32, %arg1: memref<128x16xf32, #tpu.memory_space<vmem>>, %arg2: memref<16x128xf32, #tpu.memory_space<vmem>>, %arg3: memref<128x128xbf16, #tpu.memory_space<vmem>>) attributes {dimension_semantics = [#tpu.dimension_semantics<parallel>], iteration_bounds = array<i64: 2>, scalar_prefetch = 0 : i64, scratch_operands = 0 : i64, tpu.core_type = #tpu.core_type<tc>, window_params = [{transform_indices = @transform_0, window_bounds = array<i64: 128, 16>}, {pipeline_mode = #tpu.pipeline_mode<synchronous>, transform_indices = @transform_1, window_bounds = array<i64: 16, 128>}, {transform_indices = @transform_2, window_bounds = array<i64: 128, 128>}]} {
    %c0 = arith.constant 0 : index
    %c0_0 = arith.constant 0 : index
    %0 = vector.load %arg1[%c0, %c0_0] : memref<128x16xf32, #tpu.memory_space<vmem>>, vector<128x16xf32>
    %c0_1 = arith.constant 0 : index
    %c0_2 = arith.constant 0 : index
    %1 = vector.load %arg2[%c0_1, %c0_2] : memref<16x128xf32, #tpu.memory_space<vmem>>, vector<16x128xf32>
    %cst = arith.constant dense<0.000000e+00> : vector<128x128xf32>
    %2 = tpu.matmul %0, %1, %cst {dimension_numbers = #tpu.dot_dimension_numbers<[1], [0], [0], [1], [0, 0, 1, 1], [], []>} : vector<128x16xf32>, vector<16x128xf32>, vector<128x128xf32> -> vector<128x128xf32>
    %3 = arith.truncf %2 : vector<128x128xf32> to vector<128x128xbf16>
    %c0_3 = arith.constant 0 : index
    %c0_4 = arith.constant 0 : index
    %4 = vector.load %arg3[%c0_3, %c0_4] : memref<128x128xbf16, #tpu.memory_space<vmem>>, vector<128x128xbf16>
    tpu.vector_store %arg3[%c0_3, %c0_4], %3 {strides = array<i32>} : memref<128x128xbf16, #tpu.memory_space<vmem>>, vector<128x128xbf16>,
    return
  }
  func.func @transform_0(%arg0: i32) -> (i32, i32) {
    %c0_i32 = arith.constant 0 : i32
    %c0_i32_0 = arith.constant 0 : i32
    return %arg0, %c0_i32 : i32, i32
  }
  func.func @transform_1(%arg0: i32) -> (i32, i32) {
    %c0_i32 = arith.constant 0 : i32
    %c0_i32_0 = arith.constant 0 : i32
    %c0_i32_1 = arith.constant 0 : i32
    return %c0_i32, %c0_i32_0 : i32, i32
  }
  func.func @transform_2(%arg0: i32) -> (i32, i32) {
    %c0_i32 = arith.constant 0 : i32
    %c0_i32_0 = arith.constant 0 : i32
    return %arg0, %c0_i32 : i32, i32
  }
}

module attributes {stable_mosaic.version = 11 : i64} {
  func.func @_sparse_agg_kernel(%arg0: i32, %arg1: memref<4xi32, #tpu.memory_space<smem>>, %arg2: memref<8x512xi32, #tpu.memory_space<vmem>>, %arg3: memref<512x128xbf16, #tpu.memory_space<vmem>>, %arg4: memref<1x128xf32, #tpu.memory_space<vmem>>, %arg5: memref<1x128xf32, #tpu.memory_space<vmem>>, %arg6: memref<128x128xbf16, #tpu.memory_space<vmem>>, %arg7: memref<128x128xf32, #tpu.memory_space<vmem>>) attributes {dimension_semantics = [#tpu.dimension_semantics<arbitrary>], iteration_bounds = array<i64: 4>, scalar_prefetch = 1 : i64, scratch_operands = 1 : i64, tpu.core_type = #tpu.core_type<tc>, window_params = [{transform_indices = @transform_0, window_bounds = array<i64: 8, 512>}, {transform_indices = @transform_1, window_bounds = array<i64: 512, 128>}, {pipeline_mode = #tpu.pipeline_mode<synchronous>, transform_indices = @transform_2, window_bounds = array<i64: 1, 128>}, {pipeline_mode = #tpu.pipeline_mode<synchronous>, transform_indices = @transform_3, window_bounds = array<i64: 1, 128>}, {transform_indices = @transform_4, window_bounds = array<i64: 128, 128>}]} {
    %0 = arith.index_cast %arg0 : i32 to index
    %1 = memref.load %arg1[%0] : memref<4xi32, #tpu.memory_space<smem>>
    %c1_i32 = arith.constant 1 : i32
    %2 = arith.subi %arg0, %c1_i32 : i32
    %c0_i32 = arith.constant 0 : i32
    %3 = arith.maxsi %2, %c0_i32 : i32
    %4 = arith.index_cast %3 : i32 to index
    %5 = memref.load %arg1[%4] : memref<4xi32, #tpu.memory_space<smem>>
    %c1_i32_0 = arith.constant 1 : i32
    %6 = arith.addi %arg0, %c1_i32_0 : i32
    %c3_i32 = arith.constant 3 : i32
    %7 = arith.minsi %6, %c3_i32 : i32
    %8 = arith.index_cast %7 : i32 to index
    %9 = memref.load %arg1[%8] : memref<4xi32, #tpu.memory_space<smem>>
    %c0_i32_1 = arith.constant 0 : i32
    %10 = arith.cmpi eq, %arg0, %c0_i32_1 : i32
    %11 = arith.cmpi ne, %5, %1 : i32
    %12 = arith.ori %10, %11 : i1
    %c3_i32_2 = arith.constant 3 : i32
    %13 = arith.cmpi eq, %arg0, %c3_i32_2 : i32
    %14 = arith.cmpi ne, %9, %1 : i32
    %15 = arith.ori %13, %14 : i1
    %16 = arith.extui %12 : i1 to i32
    %c0_i32_3 = arith.constant 0 : i32
    %17 = arith.cmpi ne, %16, %c0_i32_3 : i32
    scf.if %17 {
      %cst_12 = arith.constant 0.000000e+00 : f32
      %32 = vector.broadcast %cst_12 : f32 to vector<128x128xf32>
      %c0_13 = arith.constant 0 : index
      %c0_14 = arith.constant 0 : index
      %33 = vector.load %arg7[%c0_13, %c0_14] : memref<128x128xf32, #tpu.memory_space<vmem>>, vector<128x128xf32>
      tpu.vector_store %arg7[%c0_13, %c0_14], %32 {strides = array<i32>} : memref<128x128xf32, #tpu.memory_space<vmem>>, vector<128x128xf32>,
    } else {
    }
    %c0 = arith.constant 0 : index
    %c0_4 = arith.constant 0 : index
    %18 = vector.load %arg2[%c0, %c0_4] : memref<8x512xi32, #tpu.memory_space<vmem>>, vector<1x512xi32>
    %19 = tpu.iota {dimensions = array<i32: 0>} : vector<128x512xi32>
    %20 = vector.broadcast %18 : vector<1x512xi32> to vector<128x512xi32>
    %21 = arith.cmpi eq, %19, %20 : vector<128x512xi32>
    %22 = arith.extui %21 : vector<128x512xi1> to vector<128x512xi32>
    %23 = arith.sitofp %22 : vector<128x512xi32> to vector<128x512xf32>
    %24 = arith.truncf %23 : vector<128x512xf32> to vector<128x512xbf16>
    %c0_5 = arith.constant 0 : index
    %c0_6 = arith.constant 0 : index
    %25 = vector.load %arg7[%c0_5, %c0_6] : memref<128x128xf32, #tpu.memory_space<vmem>>, vector<128x128xf32>
    %c0_7 = arith.constant 0 : index
    %c0_8 = arith.constant 0 : index
    %26 = vector.load %arg3[%c0_7, %c0_8] : memref<512x128xbf16, #tpu.memory_space<vmem>>, vector<512x128xbf16>
    %cst = arith.constant dense<0.000000e+00> : vector<128x128xf32>
    %27 = tpu.matmul %24, %26, %cst {dimension_numbers = #tpu.dot_dimension_numbers<[1], [0], [0], [1], [0, 0, 1, 1], [], []>} : vector<128x512xbf16>, vector<512x128xbf16>, vector<128x128xf32> -> vector<128x128xf32>
    %28 = arith.addf %25, %27 : vector<128x128xf32>
    %c0_9 = arith.constant 0 : index
    %c0_10 = arith.constant 0 : index
    %29 = vector.load %arg7[%c0_9, %c0_10] : memref<128x128xf32, #tpu.memory_space<vmem>>, vector<128x128xf32>
    tpu.vector_store %arg7[%c0_9, %c0_10], %28 {strides = array<i32>} : memref<128x128xf32, #tpu.memory_space<vmem>>, vector<128x128xf32>,
    %30 = arith.extui %15 : i1 to i32
    %c0_i32_11 = arith.constant 0 : i32
    %31 = arith.cmpi ne, %30, %c0_i32_11 : i32
    scf.if %31 {
      %c0_12 = arith.constant 0 : index
      %c0_13 = arith.constant 0 : index
      %32 = vector.load %arg7[%c0_12, %c0_13] : memref<128x128xf32, #tpu.memory_space<vmem>>, vector<128x128xf32>
      %c0_14 = arith.constant 0 : index
      %c0_15 = arith.constant 0 : index
      %33 = vector.load %arg4[%c0_14, %c0_15] : memref<1x128xf32, #tpu.memory_space<vmem>>, vector<1x128xf32>
      %34 = vector.broadcast %33 : vector<1x128xf32> to vector<128x128xf32>
      %35 = arith.mulf %32, %34 : vector<128x128xf32>
      %c0_16 = arith.constant 0 : index
      %c0_17 = arith.constant 0 : index
      %36 = vector.load %arg5[%c0_16, %c0_17] : memref<1x128xf32, #tpu.memory_space<vmem>>, vector<1x128xf32>
      %37 = vector.broadcast %36 : vector<1x128xf32> to vector<128x128xf32>
      %38 = arith.addf %35, %37 : vector<128x128xf32>
      %cst_18 = arith.constant 0.000000e+00 : f32
      %39 = vector.broadcast %cst_18 : f32 to vector<128x128xf32>
      %40 = arith.cmpf ogt, %38, %39 : vector<128x128xf32>
      %cst_19 = arith.constant 0.000000e+00 : f32
      %41 = vector.broadcast %cst_19 : f32 to vector<128x128xf32>
      %42 = arith.minimumf %38, %41 : vector<128x128xf32>
      %43 = math.exp %42 : vector<128x128xf32>
      %cst_20 = arith.constant 1.000000e+00 : f32
      %44 = vector.broadcast %cst_20 : f32 to vector<128x128xf32>
      %45 = arith.subf %43, %44 : vector<128x128xf32>
      %46 = arith.select %40, %38, %45 : vector<128x128xi1>, vector<128x128xf32>
      %47 = arith.truncf %46 : vector<128x128xf32> to vector<128x128xbf16>
      %c0_21 = arith.constant 0 : index
      %c0_22 = arith.constant 0 : index
      %48 = vector.load %arg6[%c0_21, %c0_22] : memref<128x128xbf16, #tpu.memory_space<vmem>>, vector<128x128xbf16>
      tpu.vector_store %arg6[%c0_21, %c0_22], %47 {strides = array<i32>} : memref<128x128xbf16, #tpu.memory_space<vmem>>, vector<128x128xbf16>,
    } else {
    }
    return
  }
  func.func @transform_0(%arg0: i32, %arg1: memref<4xi32, #tpu.memory_space<smem>>) -> (i32, i32) {
    %c0_i32 = arith.constant 0 : i32
    %c0_i32_0 = arith.constant 0 : i32
    return %c0_i32, %arg0 : i32, i32
  }
  func.func @transform_1(%arg0: i32, %arg1: memref<4xi32, #tpu.memory_space<smem>>) -> (i32, i32) {
    %c0_i32 = arith.constant 0 : i32
    %c0_i32_0 = arith.constant 0 : i32
    return %arg0, %c0_i32 : i32, i32
  }
  func.func @transform_2(%arg0: i32, %arg1: memref<4xi32, #tpu.memory_space<smem>>) -> (i32, i32) {
    %c0_i32 = arith.constant 0 : i32
    %c0_i32_0 = arith.constant 0 : i32
    %c0_i32_1 = arith.constant 0 : i32
    return %c0_i32, %c0_i32_0 : i32, i32
  }
  func.func @transform_3(%arg0: i32, %arg1: memref<4xi32, #tpu.memory_space<smem>>) -> (i32, i32) {
    %c0_i32 = arith.constant 0 : i32
    %c0_i32_0 = arith.constant 0 : i32
    %c0_i32_1 = arith.constant 0 : i32
    return %c0_i32, %c0_i32_0 : i32, i32
  }
  func.func @transform_4(%arg0: i32, %arg1: memref<4xi32, #tpu.memory_space<smem>>) -> (i32, i32) {
    %0 = arith.index_cast %arg0 : i32 to index
    %1 = memref.load %arg1[%0] : memref<4xi32, #tpu.memory_space<smem>>
    %c0_i32 = arith.constant 0 : i32
    %c0_i32_0 = arith.constant 0 : i32
    return %1, %c0_i32 : i32, i32
  }
}

module attributes {stable_mosaic.version = 11 : i64} {
  func.func @_proj_kernel(%arg0: i32, %arg1: memref<128x128xbf16, #tpu.memory_space<vmem>>, %arg2: memref<128x128xbf16, #tpu.memory_space<vmem>>, %arg3: memref<128x128xbf16, #tpu.memory_space<vmem>>) attributes {dimension_semantics = [#tpu.dimension_semantics<parallel>], iteration_bounds = array<i64: 2>, scalar_prefetch = 0 : i64, scratch_operands = 0 : i64, tpu.core_type = #tpu.core_type<tc>, window_params = [{transform_indices = @transform_0, window_bounds = array<i64: 128, 128>}, {pipeline_mode = #tpu.pipeline_mode<synchronous>, transform_indices = @transform_1, window_bounds = array<i64: 128, 128>}, {transform_indices = @transform_2, window_bounds = array<i64: 128, 128>}]} {
    %c0 = arith.constant 0 : index
    %c0_0 = arith.constant 0 : index
    %0 = vector.load %arg1[%c0, %c0_0] : memref<128x128xbf16, #tpu.memory_space<vmem>>, vector<128x128xbf16>
    %c0_1 = arith.constant 0 : index
    %c0_2 = arith.constant 0 : index
    %1 = vector.load %arg2[%c0_1, %c0_2] : memref<128x128xbf16, #tpu.memory_space<vmem>>, vector<128x128xbf16>
    %cst = arith.constant dense<0.000000e+00> : vector<128x128xf32>
    %2 = tpu.matmul %0, %1, %cst {dimension_numbers = #tpu.dot_dimension_numbers<[1], [0], [0], [1], [0, 0, 1, 1], [], []>} : vector<128x128xbf16>, vector<128x128xbf16>, vector<128x128xf32> -> vector<128x128xf32>
    %3 = arith.truncf %2 : vector<128x128xf32> to vector<128x128xbf16>
    %c0_3 = arith.constant 0 : index
    %c0_4 = arith.constant 0 : index
    %4 = vector.load %arg3[%c0_3, %c0_4] : memref<128x128xbf16, #tpu.memory_space<vmem>>, vector<128x128xbf16>
    tpu.vector_store %arg3[%c0_3, %c0_4], %3 {strides = array<i32>} : memref<128x128xbf16, #tpu.memory_space<vmem>>, vector<128x128xbf16>,
    return
  }
  func.func @transform_0(%arg0: i32) -> (i32, i32) {
    %c0_i32 = arith.constant 0 : i32
    %c0_i32_0 = arith.constant 0 : i32
    return %arg0, %c0_i32 : i32, i32
  }
  func.func @transform_1(%arg0: i32) -> (i32, i32) {
    %c0_i32 = arith.constant 0 : i32
    %c0_i32_0 = arith.constant 0 : i32
    %c0_i32_1 = arith.constant 0 : i32
    return %c0_i32, %c0_i32_0 : i32, i32
  }
  func.func @transform_2(%arg0: i32) -> (i32, i32) {
    %c0_i32 = arith.constant 0 : i32
    %c0_i32_0 = arith.constant 0 : i32
    return %arg0, %c0_i32 : i32, i32
  }
}

module attributes {stable_mosaic.version = 11 : i64} {
  func.func @_sparse_agg_kernel(%arg0: i32, %arg1: memref<4xi32, #tpu.memory_space<smem>>, %arg2: memref<8x512xi32, #tpu.memory_space<vmem>>, %arg3: memref<512x128xbf16, #tpu.memory_space<vmem>>, %arg4: memref<1x128xf32, #tpu.memory_space<vmem>>, %arg5: memref<1x128xf32, #tpu.memory_space<vmem>>, %arg6: memref<128x128xf32, #tpu.memory_space<vmem>>, %arg7: memref<128x128xf32, #tpu.memory_space<vmem>>) attributes {dimension_semantics = [#tpu.dimension_semantics<arbitrary>], iteration_bounds = array<i64: 4>, scalar_prefetch = 1 : i64, scratch_operands = 1 : i64, tpu.core_type = #tpu.core_type<tc>, window_params = [{transform_indices = @transform_0, window_bounds = array<i64: 8, 512>}, {transform_indices = @transform_1, window_bounds = array<i64: 512, 128>}, {pipeline_mode = #tpu.pipeline_mode<synchronous>, transform_indices = @transform_2, window_bounds = array<i64: 1, 128>}, {pipeline_mode = #tpu.pipeline_mode<synchronous>, transform_indices = @transform_3, window_bounds = array<i64: 1, 128>}, {transform_indices = @transform_4, window_bounds = array<i64: 128, 128>}]} {
    %0 = arith.index_cast %arg0 : i32 to index
    %1 = memref.load %arg1[%0] : memref<4xi32, #tpu.memory_space<smem>>
    %c1_i32 = arith.constant 1 : i32
    %2 = arith.subi %arg0, %c1_i32 : i32
    %c0_i32 = arith.constant 0 : i32
    %3 = arith.maxsi %2, %c0_i32 : i32
    %4 = arith.index_cast %3 : i32 to index
    %5 = memref.load %arg1[%4] : memref<4xi32, #tpu.memory_space<smem>>
    %c1_i32_0 = arith.constant 1 : i32
    %6 = arith.addi %arg0, %c1_i32_0 : i32
    %c3_i32 = arith.constant 3 : i32
    %7 = arith.minsi %6, %c3_i32 : i32
    %8 = arith.index_cast %7 : i32 to index
    %9 = memref.load %arg1[%8] : memref<4xi32, #tpu.memory_space<smem>>
    %c0_i32_1 = arith.constant 0 : i32
    %10 = arith.cmpi eq, %arg0, %c0_i32_1 : i32
    %11 = arith.cmpi ne, %5, %1 : i32
    %12 = arith.ori %10, %11 : i1
    %c3_i32_2 = arith.constant 3 : i32
    %13 = arith.cmpi eq, %arg0, %c3_i32_2 : i32
    %14 = arith.cmpi ne, %9, %1 : i32
    %15 = arith.ori %13, %14 : i1
    %16 = arith.extui %12 : i1 to i32
    %c0_i32_3 = arith.constant 0 : i32
    %17 = arith.cmpi ne, %16, %c0_i32_3 : i32
    scf.if %17 {
      %cst_12 = arith.constant 0.000000e+00 : f32
      %32 = vector.broadcast %cst_12 : f32 to vector<128x128xf32>
      %c0_13 = arith.constant 0 : index
      %c0_14 = arith.constant 0 : index
      %33 = vector.load %arg7[%c0_13, %c0_14] : memref<128x128xf32, #tpu.memory_space<vmem>>, vector<128x128xf32>
      tpu.vector_store %arg7[%c0_13, %c0_14], %32 {strides = array<i32>} : memref<128x128xf32, #tpu.memory_space<vmem>>, vector<128x128xf32>,
    } else {
    }
    %c0 = arith.constant 0 : index
    %c0_4 = arith.constant 0 : index
    %18 = vector.load %arg2[%c0, %c0_4] : memref<8x512xi32, #tpu.memory_space<vmem>>, vector<1x512xi32>
    %19 = tpu.iota {dimensions = array<i32: 0>} : vector<128x512xi32>
    %20 = vector.broadcast %18 : vector<1x512xi32> to vector<128x512xi32>
    %21 = arith.cmpi eq, %19, %20 : vector<128x512xi32>
    %22 = arith.extui %21 : vector<128x512xi1> to vector<128x512xi32>
    %23 = arith.sitofp %22 : vector<128x512xi32> to vector<128x512xf32>
    %24 = arith.truncf %23 : vector<128x512xf32> to vector<128x512xbf16>
    %c0_5 = arith.constant 0 : index
    %c0_6 = arith.constant 0 : index
    %25 = vector.load %arg7[%c0_5, %c0_6] : memref<128x128xf32, #tpu.memory_space<vmem>>, vector<128x128xf32>
    %c0_7 = arith.constant 0 : index
    %c0_8 = arith.constant 0 : index
    %26 = vector.load %arg3[%c0_7, %c0_8] : memref<512x128xbf16, #tpu.memory_space<vmem>>, vector<512x128xbf16>
    %cst = arith.constant dense<0.000000e+00> : vector<128x128xf32>
    %27 = tpu.matmul %24, %26, %cst {dimension_numbers = #tpu.dot_dimension_numbers<[1], [0], [0], [1], [0, 0, 1, 1], [], []>} : vector<128x512xbf16>, vector<512x128xbf16>, vector<128x128xf32> -> vector<128x128xf32>
    %28 = arith.addf %25, %27 : vector<128x128xf32>
    %c0_9 = arith.constant 0 : index
    %c0_10 = arith.constant 0 : index
    %29 = vector.load %arg7[%c0_9, %c0_10] : memref<128x128xf32, #tpu.memory_space<vmem>>, vector<128x128xf32>
    tpu.vector_store %arg7[%c0_9, %c0_10], %28 {strides = array<i32>} : memref<128x128xf32, #tpu.memory_space<vmem>>, vector<128x128xf32>,
    %30 = arith.extui %15 : i1 to i32
    %c0_i32_11 = arith.constant 0 : i32
    %31 = arith.cmpi ne, %30, %c0_i32_11 : i32
    scf.if %31 {
      %c0_12 = arith.constant 0 : index
      %c0_13 = arith.constant 0 : index
      %32 = vector.load %arg7[%c0_12, %c0_13] : memref<128x128xf32, #tpu.memory_space<vmem>>, vector<128x128xf32>
      %c0_14 = arith.constant 0 : index
      %c0_15 = arith.constant 0 : index
      %33 = vector.load %arg4[%c0_14, %c0_15] : memref<1x128xf32, #tpu.memory_space<vmem>>, vector<1x128xf32>
      %34 = vector.broadcast %33 : vector<1x128xf32> to vector<128x128xf32>
      %35 = arith.mulf %32, %34 : vector<128x128xf32>
      %c0_16 = arith.constant 0 : index
      %c0_17 = arith.constant 0 : index
      %36 = vector.load %arg5[%c0_16, %c0_17] : memref<1x128xf32, #tpu.memory_space<vmem>>, vector<1x128xf32>
      %37 = vector.broadcast %36 : vector<1x128xf32> to vector<128x128xf32>
      %38 = arith.addf %35, %37 : vector<128x128xf32>
      %c0_18 = arith.constant 0 : index
      %c0_19 = arith.constant 0 : index
      %39 = vector.load %arg6[%c0_18, %c0_19] : memref<128x128xf32, #tpu.memory_space<vmem>>, vector<128x128xf32>
      tpu.vector_store %arg6[%c0_18, %c0_19], %38 {strides = array<i32>} : memref<128x128xf32, #tpu.memory_space<vmem>>, vector<128x128xf32>,
    } else {
    }
    return
  }
  func.func @transform_0(%arg0: i32, %arg1: memref<4xi32, #tpu.memory_space<smem>>) -> (i32, i32) {
    %c0_i32 = arith.constant 0 : i32
    %c0_i32_0 = arith.constant 0 : i32
    return %c0_i32, %arg0 : i32, i32
  }
  func.func @transform_1(%arg0: i32, %arg1: memref<4xi32, #tpu.memory_space<smem>>) -> (i32, i32) {
    %c0_i32 = arith.constant 0 : i32
    %c0_i32_0 = arith.constant 0 : i32
    return %arg0, %c0_i32 : i32, i32
  }
  func.func @transform_2(%arg0: i32, %arg1: memref<4xi32, #tpu.memory_space<smem>>) -> (i32, i32) {
    %c0_i32 = arith.constant 0 : i32
    %c0_i32_0 = arith.constant 0 : i32
    %c0_i32_1 = arith.constant 0 : i32
    return %c0_i32, %c0_i32_0 : i32, i32
  }
  func.func @transform_3(%arg0: i32, %arg1: memref<4xi32, #tpu.memory_space<smem>>) -> (i32, i32) {
    %c0_i32 = arith.constant 0 : i32
    %c0_i32_0 = arith.constant 0 : i32
    %c0_i32_1 = arith.constant 0 : i32
    return %c0_i32, %c0_i32_0 : i32, i32
  }
  func.func @transform_4(%arg0: i32, %arg1: memref<4xi32, #tpu.memory_space<smem>>) -> (i32, i32) {
    %0 = arith.index_cast %arg0 : i32 to index
    %1 = memref.load %arg1[%0] : memref<4xi32, #tpu.memory_space<smem>>
    %c0_i32 = arith.constant 0 : i32
    %c0_i32_0 = arith.constant 0 : i32
    return %1, %c0_i32 : i32, i32
  }
}

</mosaic_0001>

<bundles_post_ra>
// kernel: custom-call
= control target key start
LH: loop header
LB: loop body
LE: loop exit
PB: predicated region body
PF: predicated region fallthrough
CT: control target
= control target key end

     0   :  { %s6_s0 = inlined_call_operand.vmem [shape: u32[4], index: 0, kind: output, shape index: {}]  }

// kernel: div.25
= control target key start
LH: loop header
LB: loop body
LE: loop exit
PB: predicated region body
PF: predicated region fallthrough
CT: control target
= control target key end

     0   :  { %s187_s0 = inlined_call_operand.vmem [shape: f32[800,4], index: 0, kind: input, shape index: {}]   ;;  %s188_s1 = inlined_call_operand.vmem [shape: f32[800,4], index: 1, kind: input, shape index: {}]   ;;  %s189_s2 = inlined_call_operand.vmem [shape: f32[800,4], index: 2, kind: output, shape index: {}]  }
   0x1   :  { %v4_v0 = vld [vmem:[%s188_s1] sm:$0xf]  ;;  %v78_v1 = vld [vmem:[%s188_s1 + $0x4] sm:$0xf]  ;;  %v81_v2 = vld [vmem:[%s188_s1 + $0x8] sm:$0xf] }
   0x2   :  { %95 = vrcp.f32 %v4_v0  ;;  %v84_v3 = vld [vmem:[%s188_s1 + $0xc] sm:$0xf]  ;;  %v87_v4 = vld [vmem:[%s188_s1 + $0x10] sm:$0xf]  ;;  %v90_v5 = vld [vmem:[%s188_s1 + $0x14] sm:$0xf] }
   0x3   :  { %97 = vrcp.f32 %v78_v1  ;;  %v93_v6 = vld [vmem:[%s188_s1 + $0x18] sm:$0xf]  ;;  %v3_v7 = vld [vmem:[%s187_s0] sm:$0xf]  ;;  %v77_v8 = vld [vmem:[%s187_s0 + $0x4] sm:$0xf] }
   0x4   :  { %99 = vrcp.f32 %v81_v2  ;;  %v80_v10 = vld [vmem:[%s187_s0 + $0x8] sm:$0xf]  ;;  %v83_v13 = vld [vmem:[%s187_s0 + $0xc] sm:$0xf]  ;;  %v86_v16 = vld [vmem:[%s187_s0 + $0x10] sm:$0xf] }
   0x5   :  { %101 = vrcp.f32 %v84_v3  ;;  %v89_v19 = vld [vmem:[%s187_s0 + $0x14] sm:$0xf]  ;;  %v92_v22 = vld [vmem:[%s187_s0 + $0x18] sm:$0xf] }
   0x6   :  { %103 = vrcp.f32 %v87_v4 }
   0x7   :  { %105 = vrcp.f32 %v90_v5 }
   0x8   :  { %107 = vrcp.f32 %v93_v6 }
   0xc   :  { %v96_v9 = vpop.eup %95 }
   0xd   :  { %v98_v11 = vpop.eup %97  ;;  %v8_v12 = vmul.f32 %v96_v9, %v3_v7 }
   0xe   :  { %v100_v14 = vpop.eup %99  ;;  %v18_v15 = vmul.f32 %v98_v11, %v77_v8 }
   0xf   :  { %v102_v17 = vpop.eup %101  ;;  %10 = vst [vmem:[%s189_s2] sm:$0xf] %v8_v12  ;;  %v29_v18 = vmul.f32 %v100_v14, %v80_v10 }
  0x10   :  { %v104_v20 = vpop.eup %103  ;;  %79 = vst [vmem:[%s189_s2 + $0x4] sm:$0xf] %v18_v15  ;;  %v40_v21 = vmul.f32 %v102_v17, %v83_v13 }
  0x11   :  { %v106_v23 = vpop.eup %105  ;;  %82 = vst [vmem:[%s189_s2 + $0x8] sm:$0xf] %v29_v18  ;;  %v51_v24 = vmul.f32 %v104_v20, %v86_v16 }
  0x12   :  { %v108_v25 = vpop.eup %107  ;;  %85 = vst [vmem:[%s189_s2 + $0xc] sm:$0xf] %v40_v21  ;;  %v62_v26 = vmul.f32 %v106_v23, %v89_v19 }
  0x13   :  { %88 = vst [vmem:[%s189_s2 + $0x10] sm:$0xf] %v51_v24  ;;  %v73_v27 = vmul.f32 %v108_v25, %v92_v22 }
  0x14   :  { %91 = vst [vmem:[%s189_s2 + $0x14] sm:$0xf] %v62_v26 }
  0x15   :  { %94 = vst [vmem:[%s189_s2 + $0x18] sm:$0xf] %v73_v27 }

// kernel: _lambda_.6
= control target key start
LH: loop header
LB: loop body
LE: loop exit
PB: predicated region body
PF: predicated region fallthrough
CT: control target
= control target key end

     0   :  { %s684_s9 = smov 0   ;;  %s727_s0 = inlined_call_operand.vmem [shape: f32[256,16], index: 0, kind: input, shape index: {}]   ;;  %s728_s1 = inlined_call_operand.vmem [shape: f32[16,128], index: 1, kind: input, shape index: {}]   ;;  %s729_s2 = inlined_call_operand.vmem [shape: bf16[256,128], index: 2, kind: output, shape index: {}]  }
   0x1 LB: > { %s495_s10 = sadd.s32 4294967295, %s667_s9   ;;  %p499_p0 = scmp.ge.s32.totalorder %s667_s9, 1  ;;  %s667_s9 = sphi %s684_s9, %s12_s9  }
   0x2   : > { %p113_p1 = scmp.lt.s32.totalorder %s667_s9, 3 }
   0x4   : > { %p114_p2 = pnand %p499_p0, %p113_p1 }
   0x5   : > { %v163_v0 = vld [vmem:[%s728_s1] sm:$0xff] (!%p114_p2)  ;;  %v164_v1 = vld [vmem:[%s728_s1 + $0x8] sm:$0xff] (!%p114_p2)  ;;  %s500_s15 = sshll.u32 (!%p114_p2), %s495_s10, 4  ;;  %vm165_vm0 = vcmask (!%p114_p2), 130048  }
   0x6   : > { %117 = sbr.rel (%p114_p2) target bundleno = 247 (0xf7), region = 28  ;;  %v647_v2 = vpack.c.bf16 (!%p114_p2), %v164_v1, %v163_v0  ;;  %p136_p3 = scmp.lt.s32.totalorder (!%p114_p2), %s500_s15, 31 }
   0x8   : > { %648 = vmatprep.subr.bf16.mxu0 (!%p114_p2), %v647_v2  ;;  %651 = vmatprep.subr.bf16.mxu1 (!%p114_p2), %v647_v2 }
   0x9   : > { %650 = vmatpush3.bf16.msra.mxu0 (!%p114_p2), %v647_v2  ;;  %652 = vmatpush3.bf16.msra.mxu1 (!%p114_p2), %v647_v2 }
   0xd   : > { %s731_s15 = smov (!%p136_p3, %s500_s15), 31 }
   0xe   : > { %s501_s16 = sshll.u32 %s731_s15, 3  ;;  %s503_s20 = sshll.u32 %s731_s15, 2 }
   0xf   : > { %s139_s19 = scalar_lea.vmem %s727_s0, %s501_s16  ;;  %s145_s23 = scalar_lea.vmem %s729_s2, %s503_s20 }
  0x10   : > { %v147_v3 = vld [vmem:[%s139_s19] sm:$0xff]  ;;  %v148_v5 = vld [vmem:[%s139_s19 + $0x8] sm:$0xff]  ;;  %v149_v7 = vld [vmem:[%s139_s19 + $0x10] sm:$0xff] }
  0x11   : > { %v155_v4 = vld [vmem:[%s139_s19 + $0x40] sm:$0xff]  ;;  %623 = vmatprep.mubr.msk.f32.mxu0 %vm165_vm0, %v147_v3  ;;  %v156_v6 = vld [vmem:[%s139_s19 + $0x48] sm:$0xff]  ;;  %v157_v8 = vld [vmem:[%s139_s19 + $0x50] sm:$0xff] }
  0x12   : > { %635 = vmatprep.mubr.msk.f32.mxu1 %vm165_vm0, %v155_v4  ;;  %624 = vmatmul.mubr.msk.f32.vlgmr.msra.gmra.mrb[0].mxu0 %vm165_vm0, %v148_v5  ;;  %v150_v9 = vld [vmem:[%s139_s19 + $0x18] sm:$0xff]  ;;  %v151_v11 = vld [vmem:[%s139_s19 + $0x20] sm:$0xff]  ;;  %v152_v13 = vld [vmem:[%s139_s19 + $0x28] sm:$0xff] }
  0x13   : > { %636 = vmatmul.mubr.msk.f32.vlgmr.msra.gmra.mrb[0].mxu1 %vm165_vm0, %v156_v6  ;;  %626 = vmatprep.mubr.msk.f32.mxu0 %vm165_vm0, %v149_v7  ;;  %v158_v10 = vld [vmem:[%s139_s19 + $0x58] sm:$0xff]  ;;  %v159_v12 = vld [vmem:[%s139_s19 + $0x60] sm:$0xff]  ;;  %v160_v14 = vld [vmem:[%s139_s19 + $0x68] sm:$0xff] }
  0x14   : > { %638 = vmatprep.mubr.msk.f32.mxu1 %vm165_vm0, %v157_v8  ;;  %v153_v15 = vld [vmem:[%s139_s19 + $0x30] sm:$0xff]  ;;  %v154_v17 = vld [vmem:[%s139_s19 + $0x38] sm:$0xff] }
  0x15   : > { %v161_v16 = vld [vmem:[%s139_s19 + $0x70] sm:$0xff]  ;;  %v162_v18 = vld [vmem:[%s139_s19 + $0x78] sm:$0xff] }
  0x16   : > { %627 = vmatmul.mubr.msk.f32.gmra.mrb[2].mxu0 %vm165_vm0, %v150_v9 }
  0x17   : > { %639 = vmatmul.mubr.msk.f32.gmra.mrb[2].mxu1 %vm165_vm0, %v158_v10  ;;  %629 = vmatprep.mubr.msk.f32.mxu0 %vm165_vm0, %v151_v11 }
  0x18   : > { %641 = vmatprep.mubr.msk.f32.mxu1 %vm165_vm0, %v159_v12 }
  0x1a   : > { %630 = vmatmul.mubr.msk.f32.gmra.mrb[4].mxu0 %vm165_vm0, %v152_v13 }
  0x1b   : > { %642 = vmatmul.mubr.msk.f32.gmra.mrb[4].mxu1 %vm165_vm0, %v160_v14  ;;  %632 = vmatprep.mubr.msk.f32.mxu0 %vm165_vm0, %v153_v15 }
  0x1c   : > { %644 = vmatprep.mubr.msk.f32.mxu1 %vm165_vm0, %v161_v16 }
  0x1e   : > { %633 = vmatmul.mubr.msk.f32.gmra.mrb[6].mxu0 %vm165_vm0, %v154_v17 }
  0x1f   : > { %645 = vmatmul.mubr.msk.f32.gmra.mrb[6].mxu1 %vm165_vm0, %v162_v18 }
  0xe5   : > { %v625_v19 = vpop.f32.mrb[0].mxu0 }
  0xe6   : > { %v637_v20 = vpop.f32.mrb[0].mxu1  ;;  %v280_v21 = vpop.f32.mrb[1].mxu0 }
  0xe7   : > { %v320_v22 = vpop.f32.mrb[1].mxu1  ;;  %v557_v23 = vpack.c.bf16 %v625_v19, %v280_v21 }
  0xe8   : > { %v577_v24 = vpack.c.bf16 %v637_v20, %v320_v22 }
  0xe9   : > { %558 = vst [vmem:[%s145_s23] sm:$0xff] %v557_v23   ;;  %v628_v25 = vpop.f32.mrb[2].mxu0 }
  0xea   : > { %597 = vst [vmem:[%s145_s23 + $0x20] sm:$0xff] %v577_v24   ;;  %v640_v26 = vpop.f32.mrb[2].mxu1  ;;  %v290_v27 = vpop.f32.mrb[3].mxu0 }
  0xeb   : > { %v330_v28 = vpop.f32.mrb[3].mxu1  ;;  %v562_v29 = vpack.c.bf16 %v628_v25, %v290_v27 }
  0xec   : > { %v582_v30 = vpack.c.bf16 %v640_v26, %v330_v28 }
  0xed   : > { %594 = vst [vmem:[%s145_s23 + $0x8] sm:$0xff] %v562_v29   ;;  %v631_v31 = vpop.f32.mrb[4].mxu0 }
  0xee   : > { %598 = vst [vmem:[%s145_s23 + $0x28] sm:$0xff] %v582_v30   ;;  %v643_v32 = vpop.f32.mrb[4].mxu1  ;;  %v300_v33 = vpop.f32.mrb[5].mxu0 }
  0xef   : > { %v340_v34 = vpop.f32.mrb[5].mxu1  ;;  %v567_v35 = vpack.c.bf16 %v631_v31, %v300_v33 }
  0xf0   : > { %v587_v36 = vpack.c.bf16 %v643_v32, %v340_v34 }
  0xf1   : > { %595 = vst [vmem:[%s145_s23 + $0x10] sm:$0xff] %v567_v35   ;;  %v634_v37 = vpop.f32.mrb[6].mxu0 }
  0xf2   : > { %599 = vst [vmem:[%s145_s23 + $0x30] sm:$0xff] %v587_v36   ;;  %v646_v38 = vpop.f32.mrb[6].mxu1  ;;  %v310_v39 = vpop.f32.mrb[7].mxu0 }
  0xf3   : > { %v350_v40 = vpop.f32.mrb[7].mxu1  ;;  %v572_v41 = vpack.c.bf16 %v634_v37, %v310_v39 }
  0xf4   : > { %v592_v42 = vpack.c.bf16 %v646_v38, %v350_v40 }
  0xf5   : > { %596 = vst [vmem:[%s145_s23 + $0x18] sm:$0xff] %v572_v41  }
  0xf6   : > { %600 = vst [vmem:[%s145_s23 + $0x38] sm:$0xff] %v592_v42  }
  0xf7 PF: > { %s12_s9 = sadd.s32 1, %s667_s9  }
  0xf8   : > { %p9_p4 = scmp.ge.s32.totalorder %s12_s9, 4  }
  0xfa   :  { %11 = sbr.rel (!%p9_p4) target bundleno = 1 (0x1), region = 58 }

// kernel: _lambda_.7
= control target key start
LH: loop header
LB: loop body
LE: loop exit
PB: predicated region body
PF: predicated region fallthrough
CT: control target
= control target key end

     0   :  { %s2210_s0 = inlined_call_operand.vmem [shape: s32[4], index: 0, kind: input, shape index: {}]   ;;  %s2211_s1 = inlined_call_operand.vmem [shape: s32[8,2048], index: 1, kind: input, shape index: {}]   ;;  %s2212_s2 = inlined_call_operand.vmem [shape: bf16[2048,128], index: 2, kind: input, shape index: {}]   ;;  %s2213_s3 = inlined_call_operand.vmem [shape: f32[1,128], index: 3, kind: input, shape index: {}]   ;;  %s2214_s4 = inlined_call_operand.vmem [shape: f32[1,128], index: 4, kind: input, shape index: {}]   ;;  %s2215_s5 = inlined_call_operand.vmem [shape: bf16[256,128], index: 5, kind: output, shape index: {}]  }
   0x1   :  { %s10_s20 = sshll.u32 %s2210_s0, 4  ;;  %s11_s20 = int_to_ptr.vmem [resolvable:$true] %s10_s20 }
   0x2   :  { %s1812_s21 = scalar_lea.vmem %s11_s20, 16  ;;  %p1817_p1 = scmp.lt.s32.totalorder %s11_s20, %s11_s20 }
   0x3   :  { %p1813_p0 = scmp.ne.s32.totalorder %s11_s20, %s1812_s21  ;;  %p1818_p2 = scmp.lt.s32.totalorder %s1812_s21, %s1812_s21 }
   0x5   :  { %p1819_p3 = por %p1818_p2, %p1817_p1 }
   0x7   :  { %p1820_p4 = pnand %p1819_p3, %p1813_p0 }
   0x9   :  { %1823 = shalt.err (!%p1820_p4)  }
   0xa   :  { %s1834_s22 = smov [#allocation4]  }
   0xb   :  { %13 = dma.vmem_to_smem %s11_s20, 16, %s1834_s22, [#allocation3] }
   0xc   :  { %1828 = dma.done.wait [#allocation3], 16 }
   0xd   :  { %1829 = vsyncadd [#allocation3], 4294967280 }
   0xe   :  { %15 = sfence }
   0xf   :  { %s1870_s23 = smov 0  }
  0x10 LB: > { %s1876_s0 = sadd.s32 4294967295, %s1832_s23   ;;  %p1342_p5 = scmp.ge.s32.totalorder %s1832_s23, 1  ;;  %s1832_s23 = sphi %s1870_s23, %s21_s23  }
  0x11   : > { %p183_p6 = scmp.lt.s32.totalorder %s1832_s23, 5 }
  0x13   : > { %p184_p7 = pnand %p1342_p5, %p183_p6 }
  0x14   : > { %s1343_s24 = sshll.u32 (!%p184_p7), %s1876_s0, 2  ;;  %s1345_s25 = sshll.u32 (!%p184_p7), %s1876_s0, 6 }
  0x15   : > { %187 = sbr.rel (%p184_p7) target bundleno = 395 (0x18b), region = 36  ;;  %p216_p8 = scmp.lt.s32.totalorder (!%p184_p7), %s1343_s24, 15 }
  0x16   : > { %p222_p9 = scmp.lt.s32.totalorder (!%p184_p7), %s1345_s25, 255  ;;  %s227_s26 = sld [smem:[#allocation4 + %s1876_s0]] (!%p184_p7) }
  0x17   : > { %s236_s27 = sld [smem:[#allocation4 + %s1876_s0]] (!%p184_p7)  ;;  %s1349_s29 = sadd.s32 (!%p184_p7), 4294967295, %s1876_s0 }
  0x18   : > { %p238_p10 = scmp.gt.s32.totalorder (!%p184_p7), %s1349_s29, 0  ;;  %s241_s13 = sadd.s32 (!%p184_p7), 1, %s1876_s0 }
  0x19   : > { %p242_p12 = scmp.lt.s32.totalorder (!%p184_p7), %s241_s13, 3  ;;  %p245_p13 = scmp.eq.s32.totalorder (!%p184_p7), %s1876_s0, 0 }
  0x1a   : > { %p248_p2 = scmp.eq.s32.totalorder (!%p184_p7), %s1876_s0, 3 }
  0x1c   : > { %s2218_s24 = smov (!%p216_p8, %s1343_s24), 15  ;;  %s2220_s25 = smov (!%p222_p9, %s1345_s25), 255 }
  0x1d   : > { %s1344_s28 = sshll.u32 %s2218_s24, 3  ;;  %s1346_s8 = sshll.u32 %s2220_s25, 2 }
  0x1e   : > { %s1888_s7 = scalar_lea.vmem %s2211_s1, %s1344_s28  ;;  %s1893_s11 = scalar_lea.vmem %s2212_s2, %s1346_s8 }
  0x1f   : > { %s1347_s12 = sshll.u32 %s227_s26, 4  ;;  %s2222_s29 = smov (!%p238_p10, %s1349_s29), 0 }
  0x20   : > { %p229_p11 = scmp.lt.s32.totalorder %s1347_s12, 31  ;;  %s240_s14 = sld [smem:[#allocation4 + %s2222_s29]] }
  0x21   : > { %s2226_s13 = smov (!%p242_p12, %s241_s13), 3 }
  0x22   : > { %s2224_s12 = smov (!%p229_p11, %s1347_s12), 31  ;;  %s244_s19 = sld [smem:[#allocation4 + %s2226_s13]] }
  0x23   : > { %s1348_s15 = sshll.u32 %s2224_s12, 2 }
  0x24   : > { %s1899_s18 = scalar_lea.vmem %s2215_s5, %s1348_s15 }
  0x26   : > { %p246_p0 = scmp.ne.s32.totalorder %s240_s14, %s236_s27 }
  0x28   : > { %p247_p1 = por %p246_p0, %p245_p13  ;;  %p249_p3 = scmp.ne.s32.totalorder %s244_s19, %s236_s27 }
  0x29   : > { %v1835_v0 = vmov (%p247_p1), 0.0  }
  0x2a   : > { %p1903_p4 = por %p249_p3, %p248_p2  ;;  %253 = sbr.rel (!%p247_p1) target bundleno = 50 (0x32), region = 40  ;;  %254 = vst [vmem:[#allocation2] sm:$0xff] (%p247_p1), %v1835_v0  ;;  %255 = vst [vmem:[#allocation2 + $0x8] sm:$0xff] (%p247_p1), %v1835_v0 }
  0x2b   : > { %256 = vst [vmem:[#allocation2 + $0x10] sm:$0xff] (%p247_p1), %v1835_v0  ;;  %257 = vst [vmem:[#allocation2 + $0x18] sm:$0xff] (%p247_p1), %v1835_v0 }
  0x2c   : > { %258 = vst [vmem:[#allocation2 + $0x20] sm:$0xff] (%p247_p1), %v1835_v0  ;;  %259 = vst [vmem:[#allocation2 + $0x28] sm:$0xff] (%p247_p1), %v1835_v0 }
  0x2d   : > { %260 = vst [vmem:[#allocation2 + $0x30] sm:$0xff] (%p247_p1), %v1835_v0  ;;  %261 = vst [vmem:[#allocation2 + $0x38] sm:$0xff] (%p247_p1), %v1835_v0 }
  0x2e   : > { %262 = vst [vmem:[#allocation2 + $0x40] sm:$0xff] (%p247_p1), %v1835_v0  ;;  %263 = vst [vmem:[#allocation2 + $0x48] sm:$0xff] (%p247_p1), %v1835_v0 }
  0x2f   : > { %264 = vst [vmem:[#allocation2 + $0x50] sm:$0xff] (%p247_p1), %v1835_v0  ;;  %265 = vst [vmem:[#allocation2 + $0x58] sm:$0xff] (%p247_p1), %v1835_v0 }
  0x30   : > { %266 = vst [vmem:[#allocation2 + $0x60] sm:$0xff] (%p247_p1), %v1835_v0  ;;  %267 = vst [vmem:[#allocation2 + $0x68] sm:$0xff] (%p247_p1), %v1835_v0 }
  0x31   : > { %268 = vst [vmem:[#allocation2 + $0x70] sm:$0xff] %v1835_v0  ;;  %269 = vst [vmem:[#allocation2 + $0x78] sm:$0xff] %v1835_v0 }
  0x32 PF: > { %v1748_v1 = vld [vmem:[%s1893_s11 + $0x40] sm:$0xff]   ;;  %v1752_v5 = vld [vmem:[%s1893_s11 + $0x48] sm:$0xff]   ;;  %v1756_v9 = vld [vmem:[%s1893_s11 + $0x50] sm:$0xff]   ;;  %v271_v20 = vlaneseq  ;;  %v1836_v47 = vmov 1.0|1.0  }
  0x33   : > { %v1749_v2 = vld [vmem:[%s1893_s11 + $0xc0] sm:$0xff]   ;;  %1609 = vmatprep.subr.bf16.mxu0 %v1748_v1  ;;  %v1753_v6 = vld [vmem:[%s1893_s11 + $0xc8] sm:$0xff]   ;;  %v1757_v10 = vld [vmem:[%s1893_s11 + $0xd0] sm:$0xff]  }
  0x34   : > { %v1750_v3 = vld [vmem:[%s1893_s11] sm:$0xff]   ;;  %1673 = vmatprep.subr.bf16.mxu1 %v1749_v2  ;;  %v1754_v7 = vld [vmem:[%s1893_s11 + $0x8] sm:$0xff]   ;;  %v1758_v11 = vld [vmem:[%s1893_s11 + $0x10] sm:$0xff]   ;;  %v1930_v25 = vshrl.u32 %v271_v20, 7 }
  0x35   : > { %v1751_v4 = vld [vmem:[%s1893_s11 + $0x80] sm:$0xff]   ;;  %1610 = vmatpush3.bf16.msra.mxu0 %v1750_v3  ;;  %v1755_v8 = vld [vmem:[%s1893_s11 + $0x88] sm:$0xff]   ;;  %v1759_v12 = vld [vmem:[%s1893_s11 + $0x90] sm:$0xff]  }
  0x36   : > { %1674 = vmatpush3.bf16.msra.mxu1 %v1751_v4  ;;  %1611 = vmatprep.subr.bf16.mxu0 %v1752_v5  ;;  %v1760_v13 = vld [vmem:[%s1893_s11 + $0x58] sm:$0xff]   ;;  %v1764_v17 = vld [vmem:[%s1893_s11 + $0x60] sm:$0xff]   ;;  %v1768_v22 = vld [vmem:[%s1893_s11 + $0x68] sm:$0xff]   ;;  %v294_v30 = vsub.s32 1, %v1930_v25  ;;  %v302_v32 = vsub.s32 3, %v1930_v25  ;;  %v290_v34 = vsub.s32 0, %v1930_v25 }
  0x37   : > { %1675 = vmatprep.subr.bf16.mxu1 %v1753_v6  ;;  %v1761_v14 = vld [vmem:[%s1893_s11 + $0xd8] sm:$0xff]   ;;  %v1765_v18 = vld [vmem:[%s1893_s11 + $0xe0] sm:$0xff]   ;;  %v1769_v23 = vld [vmem:[%s1893_s11 + $0xe8] sm:$0xff]   ;;  %v298_v36 = vsub.s32 2, %v1930_v25  ;;  %v273_v39 = vadd.s32 8, %v1930_v25  ;;  %v274_v41 = vadd.s32 16, %v1930_v25 }
  0x38   : > { %v1762_v15 = vld [vmem:[%s1893_s11 + $0x18] sm:$0xff]   ;;  %v1766_v19 = vld [vmem:[%s1893_s11 + $0x20] sm:$0xff]   ;;  %v1770_v24 = vld [vmem:[%s1893_s11 + $0x28] sm:$0xff]   ;;  %v275_v42 = vadd.s32 24, %v1930_v25  ;;  %v276_v48 = vadd.s32 32, %v1930_v25  ;;  %v277_v49 = vadd.s32 40, %v1930_v25 }
  0x39   : > { %1612 = vmatpush3.bf16.msra.mxu0 %v1754_v7  ;;  %v1763_v16 = vld [vmem:[%s1893_s11 + $0x98] sm:$0xff]   ;;  %v1767_v21 = vld [vmem:[%s1893_s11 + $0xa0] sm:$0xff]   ;;  %v1771_v26 = vld [vmem:[%s1893_s11 + $0xa8] sm:$0xff]   ;;  %v278_v50 = vadd.s32 48, %v1930_v25  ;;  %v279_v51 = vadd.s32 56, %v1930_v25  ;;  %v280_v52 = vadd.s32 64, %v1930_v25 }
  0x3a   : > { %1676 = vmatpush3.bf16.msra.mxu1 %v1755_v8  ;;  %1613 = vmatprep.subr.bf16.mxu0 %v1756_v9  ;;  %v1772_v27 = vld [vmem:[%s1893_s11 + $0x70] sm:$0xff]   ;;  %v1776_v33 = vld [vmem:[%s1893_s11 + $0x78] sm:$0xff]   ;;  %v281_v53 = vadd.s32 72, %v1930_v25  ;;  %v282_v54 = vadd.s32 80, %v1930_v25  ;;  %v283_v55 = vadd.s32 88, %v1930_v25  ;;  %v284_v56 = vadd.s32 96, %v1930_v25 }
  0x3b   : > { %1677 = vmatprep.subr.bf16.mxu1 %v1757_v10  ;;  %v1773_v28 = vld [vmem:[%s1893_s11 + $0xf0] sm:$0xff]   ;;  %v1777_v35 = vld [vmem:[%s1893_s11 + $0xf8] sm:$0xff]   ;;  %v285_v57 = vadd.s32 104, %v1930_v25  ;;  %v286_v58 = vadd.s32 112, %v1930_v25  ;;  %v287_v59 = vadd.s32 120, %v1930_v25  ;;  %v528_v5 = vld [vmem:[#allocation2] sm:$0xff] }
  0x3c   : > { %v1774_v29 = vld [vmem:[%s1893_s11 + $0x30] sm:$0xff]   ;;  %v1778_v37 = vld [vmem:[%s1893_s11 + $0x38] sm:$0xff]   ;;  %v529_v10 = vld [vmem:[#allocation2 + $0x8] sm:$0xff] }
  0x3d   : > { %1614 = vmatpush3.bf16.msra.mxu0 %v1758_v11  ;;  %v1775_v31 = vld [vmem:[%s1893_s11 + $0xb0] sm:$0xff]   ;;  %v1779_v38 = vld [vmem:[%s1893_s11 + $0xb8] sm:$0xff]  }
  0x3e   : > { %1678 = vmatpush3.bf16.msra.mxu1 %v1759_v12  ;;  %1615 = vmatprep.subr.bf16.mxu0 %v1760_v13  ;;  %v270_v40 = vld [vmem:[%s1888_s7] ss:$8 sm:$0xf] }
  0x3f   : > { %1679 = vmatprep.subr.bf16.mxu1 %v1761_v14  ;;  %v1949_v43 = vrot.slane %v270_v40, %v294_v30  ;;  %v1951_v44 = vrot.slane %v270_v40, %v302_v32  ;;  %v1953_v45 = vrot.slane %v270_v40, %v290_v34  ;;  %v1955_v46 = vrot.slane %v270_v40, %v298_v36 }
  0x41   : > { %1616 = vmatpush3.bf16.msra.mxu0 %v1762_v15  ;;  %vm305_vm0 = vcmp.eq.s32.totalorder %v1930_v25, %v1949_v43  ;;  %vm309_vm1 = vcmp.eq.s32.totalorder %v273_v39, %v1949_v43  ;;  %vm307_vm2 = vcmp.eq.s32.totalorder %v1930_v25, %v1951_v44  ;;  %vm311_vm3 = vcmp.eq.s32.totalorder %v273_v39, %v1951_v44 }
  0x42   : > { %1680 = vmatpush3.bf16.msra.mxu1 %v1763_v16  ;;  %1617 = vmatprep.subr.bf16.mxu0 %v1764_v17  ;;  %vm1446_vm4 = vmpackc.low %vm309_vm1, %vm305_vm0  ;;  %vm304_vm5 = vcmp.eq.s32.totalorder %v1930_v25, %v1953_v45  ;;  %vm308_vm6 = vcmp.eq.s32.totalorder %v273_v39, %v1953_v45  ;;  %vm306_vm7 = vcmp.eq.s32.totalorder %v1930_v25, %v1955_v46 }
  0x43   : > { %1681 = vmatprep.subr.bf16.mxu1 %v1765_v18  ;;  %vm310_vm8 = vcmp.eq.s32.totalorder %v273_v39, %v1955_v46  ;;  %1447 = vmatprep.mubr.msk.bf16.mxu0 %vm1446_vm4, %v1836_v47  ;;  %vm1478_vm9 = vmpackc.low %vm311_vm3, %vm307_vm2  ;;  %vm313_vm10 = vcmp.eq.s32.totalorder %v274_v41, %v1949_v43  ;;  %vm317_vm11 = vcmp.eq.s32.totalorder %v275_v42, %v1949_v43 }
  0x44   : > { %1479 = vmatprep.mubr.msk.bf16.mxu1 %vm1478_vm9, %v1836_v47  ;;  %vm1448_vm12 = vmpackc.low %vm308_vm6, %vm304_vm5  ;;  %vm315_vm13 = vcmp.eq.s32.totalorder %v274_v41, %v1951_v44  ;;  %vm319_vm14 = vcmp.eq.s32.totalorder %v275_v42, %v1951_v44  ;;  %vm312_vm1 = vcmp.eq.s32.totalorder %v274_v41, %v1953_v45  ;;  %vm316_vm2 = vcmp.eq.s32.totalorder %v275_v42, %v1953_v45 }
  0x45   : > { %1618 = vmatpush3.bf16.msra.mxu0 %v1766_v19  ;;  %vm1480_vm15 = vmpackc.low %vm310_vm8, %vm306_vm7  ;;  %vm314_vm4 = vcmp.eq.s32.totalorder %v274_v41, %v1955_v46  ;;  %vm318_vm5 = vcmp.eq.s32.totalorder %v275_v42, %v1955_v46  ;;  %vm321_vm6 = vcmp.eq.s32.totalorder %v276_v48, %v1949_v43  ;;  %vm325_vm7 = vcmp.eq.s32.totalorder %v277_v49, %v1949_v43  ;;  %v532_v41 = vld [vmem:[#allocation2 + $0x20] sm:$0xff] }
  0x46   : > { %1682 = vmatpush3.bf16.msra.mxu1 %v1767_v21  ;;  %1619 = vmatprep.subr.bf16.mxu0 %v1768_v22  ;;  %vm1450_vm0 = vmpackc.low %vm317_vm11, %vm313_vm10  ;;  %vm323_vm9 = vcmp.eq.s32.totalorder %v276_v48, %v1951_v44  ;;  %vm327_vm10 = vcmp.eq.s32.totalorder %v277_v49, %v1951_v44 }
  0x47   : > { %1683 = vmatprep.subr.bf16.mxu1 %v1769_v23  ;;  %vm1482_vm3 = vmpackc.low %vm319_vm14, %vm315_vm13  ;;  %vm320_vm13 = vcmp.eq.s32.totalorder %v276_v48, %v1953_v45  ;;  %vm324_vm14 = vcmp.eq.s32.totalorder %v277_v49, %v1953_v45  ;;  %v530_v23 = vld [vmem:[#allocation2 + $0x10] sm:$0xff] }
  0x48   : > { %vm1452_vm8 = vmpackc.low %vm316_vm2, %vm312_vm1  ;;  %vm326_vm1 = vcmp.eq.s32.totalorder %v277_v49, %v1955_v46  ;;  %vm329_vm2 = vcmp.eq.s32.totalorder %v278_v50, %v1949_v43 }
  0x49   : > { %1620 = vmatpush3.bf16.msra.mxu0 %v1770_v24  ;;  %vm1484_vm11 = vmpackc.low %vm318_vm5, %vm314_vm4  ;;  %vm331_vm5 = vcmp.eq.s32.totalorder %v278_v50, %v1951_v44 }
  0x4a   : > { %1684 = vmatpush3.bf16.msra.mxu1 %v1771_v26  ;;  %1621 = vmatprep.subr.bf16.mxu0 %v1772_v27  ;;  %vm1456_vm4 = vmpackc.low %vm324_vm14, %vm320_vm13  ;;  %vm337_vm13 = vcmp.eq.s32.totalorder %v280_v52, %v1949_v43  ;;  %vm341_vm14 = vcmp.eq.s32.totalorder %v281_v53, %v1949_v43 }
  0x4b   : > { %1685 = vmatprep.subr.bf16.mxu1 %v1773_v28  ;;  %v531_v28 = vld [vmem:[#allocation2 + $0x18] sm:$0xff] }
  0x4d   : > { %1622 = vmatpush3.bf16.msra.mxu0 %v1774_v29 }
  0x4e   : > { %1686 = vmatpush3.bf16.msra.mxu1 %v1775_v31  ;;  %1623 = vmatprep.subr.bf16.mxu0 %v1776_v33 }
  0x4f   : > { %1687 = vmatprep.subr.bf16.mxu1 %v1777_v35 }
  0x51   : > { %1624 = vmatpush3.bf16.msra.mxu0 %v1778_v37 }
  0x52   : > { %1688 = vmatpush3.bf16.msra.mxu1 %v1779_v38 }
  0x54   : > { %1449 = vmatmul.mubr.msk.bf16.vlgmr.msra.gmra.mrb[0].mxu0 %vm1448_vm12, %v1836_v47  ;;  %vm1454_vm12 = vmpackc.low %vm325_vm7, %vm321_vm6  ;;  %vm335_vm6 = vcmp.eq.s32.totalorder %v279_v51, %v1951_v44 }
  0x55   : > { %1481 = vmatmul.mubr.msk.bf16.vlgmr.msra.gmra.mrb[0].mxu1 %vm1480_vm15, %v1836_v47  ;;  %1451 = vmatprep.mubr.msk.bf16.mxu0 %vm1450_vm0, %v1836_v47  ;;  %vm1486_vm15 = vmpackc.low %vm327_vm10, %vm323_vm9  ;;  %vm322_vm0 = vcmp.eq.s32.totalorder %v276_v48, %v1955_v46  ;;  %vm328_vm10 = vcmp.eq.s32.totalorder %v278_v50, %v1953_v45 }
  0x56   : > { %1483 = vmatprep.mubr.msk.bf16.mxu1 %vm1482_vm3, %v1836_v47  ;;  %vm333_vm3 = vcmp.eq.s32.totalorder %v279_v51, %v1949_v43  ;;  %vm1488_vm7 = vmpackc.low %vm326_vm1, %vm322_vm0  ;;  %vm339_vm1 = vcmp.eq.s32.totalorder %v280_v52, %v1951_v44 }
  0x57   : > { %vm1490_vm9 = vmpackc.low %vm335_vm6, %vm331_vm5  ;;  %vm336_vm6 = vcmp.eq.s32.totalorder %v280_v52, %v1953_v45 }
  0x5c   : > { %1453 = vmatmul.mubr.msk.bf16.gmra.mrb[4].mxu0 %vm1452_vm8, %v1836_v47  ;;  %vm1458_vm8 = vmpackc.low %vm333_vm3, %vm329_vm2  ;;  %vm343_vm2 = vcmp.eq.s32.totalorder %v281_v53, %v1951_v44 }
  0x5d   : > { %1485 = vmatmul.mubr.msk.bf16.gmra.mrb[4].mxu1 %vm1484_vm11, %v1836_v47  ;;  %1455 = vmatprep.mubr.msk.bf16.mxu0 %vm1454_vm12, %v1836_v47  ;;  %vm332_vm11 = vcmp.eq.s32.totalorder %v279_v51, %v1953_v45  ;;  %vm330_vm12 = vcmp.eq.s32.totalorder %v278_v50, %v1955_v46  ;;  %vm1494_vm5 = vmpackc.low %vm343_vm2, %vm339_vm1  ;;  %vm344_vm2 = vcmp.eq.s32.totalorder %v282_v54, %v1953_v45 }
  0x5e   : > { %1487 = vmatprep.mubr.msk.bf16.mxu1 %vm1486_vm15, %v1836_v47  ;;  %vm334_vm15 = vcmp.eq.s32.totalorder %v279_v51, %v1955_v46  ;;  %vm1460_vm0 = vmpackc.low %vm332_vm11, %vm328_vm10  ;;  %vm345_vm10 = vcmp.eq.s32.totalorder %v282_v54, %v1949_v43  ;;  %vm349_vm11 = vcmp.eq.s32.totalorder %v283_v55, %v1949_v43 }
  0x5f   : > { %vm1492_vm3 = vmpackc.low %vm334_vm15, %vm330_vm12  ;;  %vm347_vm15 = vcmp.eq.s32.totalorder %v282_v54, %v1951_v44 }
  0x64   : > { %1457 = vmatmul.mubr.msk.bf16.gmra.mrb[8].mxu0 %vm1456_vm4, %v1836_v47  ;;  %vm1462_vm4 = vmpackc.low %vm341_vm14, %vm337_vm13  ;;  %vm351_vm13 = vcmp.eq.s32.totalorder %v283_v55, %v1951_v44 }
  0x65   : > { %1489 = vmatmul.mubr.msk.bf16.gmra.mrb[8].mxu1 %vm1488_vm7, %v1836_v47  ;;  %1459 = vmatprep.mubr.msk.bf16.mxu0 %vm1458_vm8, %v1836_v47  ;;  %vm340_vm7 = vcmp.eq.s32.totalorder %v281_v53, %v1953_v45  ;;  %vm338_vm8 = vcmp.eq.s32.totalorder %v280_v52, %v1955_v46  ;;  %vm1498_vm1 = vmpackc.low %vm351_vm13, %vm347_vm15  ;;  %vm352_vm13 = vcmp.eq.s32.totalorder %v284_v56, %v1953_v45 }
  0x66   : > { %1491 = vmatprep.mubr.msk.bf16.mxu1 %vm1490_vm9, %v1836_v47  ;;  %vm342_vm9 = vcmp.eq.s32.totalorder %v281_v53, %v1955_v46  ;;  %vm1464_vm12 = vmpackc.low %vm340_vm7, %vm336_vm6  ;;  %vm353_vm6 = vcmp.eq.s32.totalorder %v284_v56, %v1949_v43  ;;  %vm357_vm7 = vcmp.eq.s32.totalorder %v285_v57, %v1949_v43 }
  0x67   : > { %vm1496_vm14 = vmpackc.low %vm342_vm9, %vm338_vm8  ;;  %vm355_vm9 = vcmp.eq.s32.totalorder %v284_v56, %v1951_v44 }
  0x6c   : > { %1461 = vmatmul.mubr.msk.bf16.gmra.mrb[12].mxu0 %vm1460_vm0, %v1836_v47  ;;  %vm1466_vm0 = vmpackc.low %vm349_vm11, %vm345_vm10  ;;  %vm359_vm10 = vcmp.eq.s32.totalorder %v285_v57, %v1951_v44 }
  0x6d   : > { %1493 = vmatmul.mubr.msk.bf16.gmra.mrb[12].mxu1 %vm1492_vm3, %v1836_v47  ;;  %1463 = vmatprep.mubr.msk.bf16.mxu0 %vm1462_vm4, %v1836_v47  ;;  %vm348_vm3 = vcmp.eq.s32.totalorder %v283_v55, %v1953_v45  ;;  %vm346_vm4 = vcmp.eq.s32.totalorder %v282_v54, %v1955_v46  ;;  %vm1502_vm15 = vmpackc.low %vm359_vm10, %vm355_vm9  ;;  %vm360_vm10 = vcmp.eq.s32.totalorder %v286_v58, %v1953_v45 }
  0x6e   : > { %1495 = vmatprep.mubr.msk.bf16.mxu1 %vm1494_vm5, %v1836_v47  ;;  %vm350_vm5 = vcmp.eq.s32.totalorder %v283_v55, %v1955_v46  ;;  %vm1468_vm8 = vmpackc.low %vm348_vm3, %vm344_vm2  ;;  %vm361_vm2 = vcmp.eq.s32.totalorder %v286_v58, %v1949_v43  ;;  %vm365_vm3 = vcmp.eq.s32.totalorder %v287_v59, %v1949_v43 }
  0x6f   : > { %vm1500_vm11 = vmpackc.low %vm350_vm5, %vm346_vm4  ;;  %vm363_vm5 = vcmp.eq.s32.totalorder %v286_v58, %v1951_v44 }
  0x74   : > { %1465 = vmatmul.mubr.msk.bf16.gmra.mrb[16].mxu0 %vm1464_vm12, %v1836_v47  ;;  %vm1470_vm12 = vmpackc.low %vm357_vm7, %vm353_vm6  ;;  %vm367_vm6 = vcmp.eq.s32.totalorder %v287_v59, %v1951_v44 }
  0x75   : > { %1497 = vmatmul.mubr.msk.bf16.gmra.mrb[16].mxu1 %vm1496_vm14, %v1836_v47  ;;  %1467 = vmatprep.mubr.msk.bf16.mxu0 %vm1466_vm0, %v1836_v47  ;;  %vm356_vm14 = vcmp.eq.s32.totalorder %v285_v57, %v1953_v45  ;;  %vm354_vm0 = vcmp.eq.s32.totalorder %v284_v56, %v1955_v46  ;;  %vm1506_vm9 = vmpackc.low %vm367_vm6, %vm363_vm5 }
  0x76   : > { %1499 = vmatprep.mubr.msk.bf16.mxu1 %vm1498_vm1, %v1836_v47  ;;  %vm358_vm1 = vcmp.eq.s32.totalorder %v285_v57, %v1955_v46  ;;  %vm1472_vm4 = vmpackc.low %vm356_vm14, %vm352_vm13 }
  0x77   : > { %vm1504_vm7 = vmpackc.low %vm358_vm1, %vm354_vm0 }
  0x7c   : > { %1469 = vmatmul.mubr.msk.bf16.gmra.mrb[20].mxu0 %vm1468_vm8, %v1836_v47  ;;  %vm1474_vm8 = vmpackc.low %vm365_vm3, %vm361_vm2 }
  0x7d   : > { %1501 = vmatmul.mubr.msk.bf16.gmra.mrb[20].mxu1 %vm1500_vm11, %v1836_v47  ;;  %1471 = vmatprep.mubr.msk.bf16.mxu0 %vm1470_vm12, %v1836_v47  ;;  %vm364_vm11 = vcmp.eq.s32.totalorder %v287_v59, %v1953_v45  ;;  %vm362_vm12 = vcmp.eq.s32.totalorder %v286_v58, %v1955_v46 }
  0x7e   : > { %1503 = vmatprep.mubr.msk.bf16.mxu1 %vm1502_vm15, %v1836_v47  ;;  %vm366_vm15 = vcmp.eq.s32.totalorder %v287_v59, %v1955_v46  ;;  %vm1476_vm13 = vmpackc.low %vm364_vm11, %vm360_vm10  ;;  %v533_v46 = vld [vmem:[#allocation2 + $0x28] sm:$0xff]  ;;  %v534_v59 = vld [vmem:[#allocation2 + $0x30] sm:$0xff] }
  0x7f   : > { %vm1508_vm14 = vmpackc.low %vm366_vm15, %vm362_vm12 }
  0x84   : > { %1473 = vmatmul.mubr.msk.bf16.gmra.mrb[24].mxu0 %vm1472_vm4, %v1836_v47 }
  0x85   : > { %1505 = vmatmul.mubr.msk.bf16.gmra.mrb[24].mxu1 %vm1504_vm7, %v1836_v47  ;;  %1475 = vmatprep.mubr.msk.bf16.mxu0 %vm1474_vm8, %v1836_v47 }
  0x86   : > { %1507 = vmatprep.mubr.msk.bf16.mxu1 %vm1506_vm9, %v1836_v47 }
  0x8c   : > { %1477 = vmatmul.mubr.msk.bf16.gmra.mrb[28].mxu0 %vm1476_vm13, %v1836_v47 }
  0x8d   : > { %1509 = vmatmul.mubr.msk.bf16.gmra.mrb[28].mxu1 %vm1508_vm14, %v1836_v47 }
 0x127   : > { %v1625_v60 = vpop.f32.mrb[0].mxu0 }
 0x128   : > { %v1689_v61 = vpop.f32.mrb[0].mxu1  ;;  %v1626_v62 = vpop.f32.mrb[1].mxu0 }
 0x129   : > { %v1627_v63 = vadd.f32 %v1626_v62, %v1625_v60  ;;  %v1690_v0 = vpop.f32.mrb[1].mxu1  ;;  %v1628_v1 = vpop.f32.mrb[2].mxu0 }
 0x12a   : > { %v1691_v2 = vadd.f32 %v1690_v0, %v1689_v61  ;;  %v1692_v3 = vpop.f32.mrb[2].mxu1  ;;  %v1629_v4 = vpop.f32.mrb[3].mxu0  ;;  %v535_v0 = vld [vmem:[#allocation2 + $0x38] sm:$0xff] }
 0x12b   : > { %v1630_v6 = vadd.f32 %v1629_v4, %v1628_v1  ;;  %v1693_v7 = vpop.f32.mrb[3].mxu1 }
 0x12c   : > { %v932_v8 = vadd.f32 %v1691_v2, %v1627_v63  ;;  %v1694_v9 = vadd.f32 %v1693_v7, %v1692_v3 }
 0x12e   : > { %v994_v11 = vadd.f32 %v932_v8, %v528_v5  ;;  %v935_v12 = vadd.f32 %v1694_v9, %v1630_v6 }
 0x12f   : > { %v1631_v13 = vpop.f32.mrb[4].mxu0 }
 0x130   : > { %1010 = vst [vmem:[#allocation2] sm:$0xff] %v994_v11  ;;  %v995_v14 = vadd.f32 %v935_v12, %v529_v10  ;;  %v1695_v15 = vpop.f32.mrb[4].mxu1  ;;  %v1632_v16 = vpop.f32.mrb[5].mxu0 }
 0x131   : > { %v1633_v17 = vadd.f32 %v1632_v16, %v1631_v13  ;;  %v1696_v18 = vpop.f32.mrb[5].mxu1  ;;  %v1634_v19 = vpop.f32.mrb[6].mxu0  ;;  %v536_v13 = vld [vmem:[#allocation2 + $0x40] sm:$0xff] }
 0x132   : > { %1011 = vst [vmem:[#allocation2 + $0x8] sm:$0xff] %v995_v14  ;;  %v1697_v20 = vadd.f32 %v1696_v18, %v1695_v15  ;;  %v1698_v21 = vpop.f32.mrb[6].mxu1  ;;  %v1635_v22 = vpop.f32.mrb[7].mxu0  ;;  %v537_v18 = vld [vmem:[#allocation2 + $0x48] sm:$0xff] }
 0x133   : > { %v1636_v24 = vadd.f32 %v1635_v22, %v1634_v19  ;;  %v1699_v25 = vpop.f32.mrb[7].mxu1 }
 0x134   : > { %v940_v26 = vadd.f32 %v1697_v20, %v1633_v17  ;;  %v1700_v27 = vadd.f32 %v1699_v25, %v1698_v21 }
 0x136   : > { %v996_v29 = vadd.f32 %v940_v26, %v530_v23  ;;  %v943_v30 = vadd.f32 %v1700_v27, %v1636_v24 }
 0x137   : > { %v1637_v31 = vpop.f32.mrb[8].mxu0 }
 0x138   : > { %1012 = vst [vmem:[#allocation2 + $0x10] sm:$0xff] %v996_v29  ;;  %v997_v32 = vadd.f32 %v943_v30, %v531_v28  ;;  %v1701_v33 = vpop.f32.mrb[8].mxu1  ;;  %v1638_v34 = vpop.f32.mrb[9].mxu0 }
 0x139   : > { %v1639_v35 = vadd.f32 %v1638_v34, %v1637_v31  ;;  %v1702_v36 = vpop.f32.mrb[9].mxu1  ;;  %v1640_v37 = vpop.f32.mrb[10].mxu0  ;;  %v538_v31 = vld [vmem:[#allocation2 + $0x50] sm:$0xff] }
 0x13a   : > { %1013 = vst [vmem:[#allocation2 + $0x18] sm:$0xff] %v997_v32  ;;  %v1703_v38 = vadd.f32 %v1702_v36, %v1701_v33  ;;  %v1704_v39 = vpop.f32.mrb[10].mxu1  ;;  %v1641_v40 = vpop.f32.mrb[11].mxu0  ;;  %v539_v36 = vld [vmem:[#allocation2 + $0x58] sm:$0xff] }
 0x13b   : > { %v1642_v42 = vadd.f32 %v1641_v40, %v1640_v37  ;;  %v1705_v43 = vpop.f32.mrb[11].mxu1 }
 0x13c   : > { %v948_v44 = vadd.f32 %v1703_v38, %v1639_v35  ;;  %v1706_v45 = vadd.f32 %v1705_v43, %v1704_v39 }
 0x13e   : > { %v998_v47 = vadd.f32 %v948_v44, %v532_v41  ;;  %v951_v48 = vadd.f32 %v1706_v45, %v1642_v42 }
 0x13f   : > { %v1643_v49 = vpop.f32.mrb[12].mxu0 }
 0x140   : > { %1014 = vst [vmem:[#allocation2 + $0x20] sm:$0xff] %v998_v47  ;;  %v999_v50 = vadd.f32 %v951_v48, %v533_v46  ;;  %v1707_v51 = vpop.f32.mrb[12].mxu1  ;;  %v1644_v52 = vpop.f32.mrb[13].mxu0 }
 0x141   : > { %v1645_v53 = vadd.f32 %v1644_v52, %v1643_v49  ;;  %v1708_v54 = vpop.f32.mrb[13].mxu1  ;;  %v1646_v55 = vpop.f32.mrb[14].mxu0  ;;  %v540_v49 = vld [vmem:[#allocation2 + $0x60] sm:$0xff] }
 0x142   : > { %1015 = vst [vmem:[#allocation2 + $0x28] sm:$0xff] %v999_v50  ;;  %v1709_v56 = vadd.f32 %v1708_v54, %v1707_v51  ;;  %v1710_v57 = vpop.f32.mrb[14].mxu1  ;;  %v1647_v58 = vpop.f32.mrb[15].mxu0  ;;  %v541_v54 = vld [vmem:[#allocation2 + $0x68] sm:$0xff] }
 0x143   : > { %v1648_v60 = vadd.f32 %v1647_v58, %v1646_v55  ;;  %v1711_v61 = vpop.f32.mrb[15].mxu1 }
 0x144   : > { %v956_v62 = vadd.f32 %v1709_v56, %v1645_v53  ;;  %v1712_v63 = vadd.f32 %v1711_v61, %v1710_v57 }
 0x146   : > { %v1000_v1 = vadd.f32 %v956_v62, %v534_v59  ;;  %v959_v2 = vadd.f32 %v1712_v63, %v1648_v60 }
 0x147   : > { %v1649_v3 = vpop.f32.mrb[16].mxu0 }
 0x148   : > { %1016 = vst [vmem:[#allocation2 + $0x30] sm:$0xff] %v1000_v1  ;;  %v1001_v4 = vadd.f32 %v959_v2, %v535_v0  ;;  %v1713_v5 = vpop.f32.mrb[16].mxu1  ;;  %v1650_v6 = vpop.f32.mrb[17].mxu0 }
 0x149   : > { %v1651_v7 = vadd.f32 %v1650_v6, %v1649_v3  ;;  %v1714_v8 = vpop.f32.mrb[17].mxu1  ;;  %v1652_v9 = vpop.f32.mrb[18].mxu0  ;;  %v542_v3 = vld [vmem:[#allocation2 + $0x70] sm:$0xff] }
 0x14a   : > { %1017 = vst [vmem:[#allocation2 + $0x38] sm:$0xff] %v1001_v4  ;;  %v1715_v10 = vadd.f32 %v1714_v8, %v1713_v5  ;;  %v1716_v11 = vpop.f32.mrb[18].mxu1  ;;  %v1653_v12 = vpop.f32.mrb[19].mxu0  ;;  %v543_v8 = vld [vmem:[#allocation2 + $0x78] sm:$0xff] }
 0x14b   : > { %v1654_v14 = vadd.f32 %v1653_v12, %v1652_v9  ;;  %v1717_v15 = vpop.f32.mrb[19].mxu1  ;;  %v1029_v12 = vld [vmem:[#allocation2] sm:$0xff] (%p1903_p4) }
 0x14c   : > { %v964_v16 = vadd.f32 %v1715_v10, %v1651_v7  ;;  %v1718_v17 = vadd.f32 %v1717_v15, %v1716_v11 }
 0x14e   : > { %v1002_v19 = vadd.f32 %v964_v16, %v536_v13  ;;  %v967_v20 = vadd.f32 %v1718_v17, %v1654_v14  ;;  %v1030_v13 = vld [vmem:[#allocation2 + $0x8] sm:$0xff] (%p1903_p4)  ;;  %v2074_v14 = vld [vmem:[%s2213_s3] ss:$0 sm:$0xff] (%p1903_p4) }
 0x14f   : > { %v1655_v21 = vpop.f32.mrb[20].mxu0  ;;  %v1052_v15 = vmul.f32 (%p1903_p4), %v2074_v14, %v1029_v12  ;;  %v1053_v16 = vmul.f32 (%p1903_p4), %v2074_v14, %v1030_v13  ;;  %v2081_v17 = vld [vmem:[%s2214_s4] ss:$0 sm:$0xff] (%p1903_p4) }
 0x150   : > { %1018 = vst [vmem:[#allocation2 + $0x40] sm:$0xff] %v1002_v19  ;;  %v1003_v22 = vadd.f32 %v967_v20, %v537_v18  ;;  %v1719_v23 = vpop.f32.mrb[20].mxu1  ;;  %v1656_v24 = vpop.f32.mrb[21].mxu0  ;;  %v1031_v18 = vld [vmem:[#allocation2 + $0x10] sm:$0xff] (%p1903_p4)  ;;  %v1032_v19 = vld [vmem:[#allocation2 + $0x18] sm:$0xff] (%p1903_p4) }
 0x151   : > { %v1657_v25 = vadd.f32 %v1656_v24, %v1655_v21  ;;  %v1720_v26 = vpop.f32.mrb[21].mxu1  ;;  %v1658_v27 = vpop.f32.mrb[22].mxu0  ;;  %v1054_v20 = vmul.f32 (%p1903_p4), %v2074_v14, %v1031_v18  ;;  %v1055_v21 = vmul.f32 (%p1903_p4), %v2074_v14, %v1032_v19  ;;  %v1035_v24 = vld [vmem:[#allocation2 + $0x30] sm:$0xff] (%p1903_p4) }
 0x152   : > { %1019 = vst [vmem:[#allocation2 + $0x48] sm:$0xff] %v1003_v22  ;;  %v1721_v28 = vadd.f32 %v1720_v26, %v1719_v23  ;;  %v1722_v29 = vpop.f32.mrb[22].mxu1  ;;  %v1659_v30 = vpop.f32.mrb[23].mxu0  ;;  %v1033_v22 = vld [vmem:[#allocation2 + $0x20] sm:$0xff] (%p1903_p4)  ;;  %v1034_v23 = vld [vmem:[#allocation2 + $0x28] sm:$0xff] (%p1903_p4)  ;;  %v2089_v26 = vadd.f32 (%p1903_p4), %v2081_v17, %v1053_v16 }
 0x153   : > { %v1660_v32 = vadd.f32 %v1659_v30, %v1658_v27  ;;  %v1723_v33 = vpop.f32.mrb[23].mxu1  ;;  %v1056_v27 = vmul.f32 (%p1903_p4), %v2074_v14, %v1033_v22  ;;  %v2094_v30 = vadd.f32 (%p1903_p4), %v2081_v17, %v1054_v20 }
 0x154   : > { %v972_v34 = vadd.f32 %v1721_v28, %v1657_v25  ;;  %v1724_v35 = vadd.f32 %v1723_v33, %v1722_v29  ;;  %v2086_v25 = vadd.f32 (%p1903_p4), %v2081_v17, %v1052_v15  ;;  %v1057_v28 = vmul.f32 (%p1903_p4), %v2074_v14, %v1034_v23  ;;  %v1036_v29 = vld [vmem:[#allocation2 + $0x38] sm:$0xff] (%p1903_p4) }
 0x155   : > { %v1059_v33 = vmul.f32 (%p1903_p4), %v2074_v14, %v1036_v29  ;;  %vm1092_vm1 = vcmp.gt.f32.partialorder (%p1903_p4), %v2089_v26, 0.0  ;;  %vm1093_vm2 = vcmp.gt.f32.partialorder (%p1903_p4), %v2094_v30, 0.0 }
 0x156   : > { %v1004_v37 = vadd.f32 %v972_v34, %v538_v31  ;;  %v975_v38 = vadd.f32 %v1724_v35, %v1660_v32  ;;  %v2097_v31 = vadd.f32 (%p1903_p4), %v2081_v17, %v1055_v21  ;;  %v1058_v32 = vmul.f32 (%p1903_p4), %v2074_v14, %v1035_v24 }
 0x157   : > { %v1661_v39 = vpop.f32.mrb[24].mxu0  ;;  %v1107_v34 = vmin.f32 (%p1903_p4), %v2086_v25, 0.0  ;;  %v1108_v35 = vmin.f32 (%p1903_p4), %v2089_v26, 0.0  ;;  %vm1091_vm0 = vcmp.gt.f32.partialorder (%p1903_p4), %v2086_v25, 0.0 }
 0x158   : > { %1020 = vst [vmem:[#allocation2 + $0x50] sm:$0xff] %v1004_v37  ;;  %v1005_v40 = vadd.f32 %v975_v38, %v539_v36  ;;  %v1725_v41 = vpop.f32.mrb[24].mxu1  ;;  %v1662_v42 = vpop.f32.mrb[25].mxu0  ;;  %v1109_v36 = vmin.f32 (%p1903_p4), %v2094_v30, 0.0  ;;  %v1110_v37 = vmin.f32 (%p1903_p4), %v2097_v31, 0.0  ;;  %vm1094_vm3 = vcmp.gt.f32.partialorder (%p1903_p4), %v2097_v31, 0.0 }
 0x159   : > { %v1663_v43 = vadd.f32 %v1662_v42, %v1661_v39  ;;  %v1726_v44 = vpop.f32.mrb[25].mxu1  ;;  %v1664_v45 = vpop.f32.mrb[26].mxu0  ;;  %v1123_v38 = vmul.f32 (%p1903_p4), 1.442695, %v1107_v34  ;;  %v1125_v39 = vmul.f32 (%p1903_p4), 1.442695, %v1108_v35 }
 0x15a   : > { %1021 = vst [vmem:[#allocation2 + $0x58] sm:$0xff] %v1005_v40  ;;  %v1727_v46 = vadd.f32 %v1726_v44, %v1725_v41  ;;  %v1728_v47 = vpop.f32.mrb[26].mxu1  ;;  %v1665_v48 = vpop.f32.mrb[27].mxu0  ;;  %v2106_v40 = vadd.f32 (%p1903_p4), %v2081_v17, %v1056_v27  ;;  %v2109_v41 = vadd.f32 (%p1903_p4), %v2081_v17, %v1057_v28  ;;  %v1127_v42 = vmul.f32 (%p1903_p4), 1.442695, %v1109_v36 }
 0x15b   : > { %v1666_v50 = vadd.f32 %v1665_v48, %v1664_v45  ;;  %v1729_v51 = vpop.f32.mrb[27].mxu1  ;;  %v2112_v44 = vadd.f32 (%p1903_p4), %v2081_v17, %v1058_v32  ;;  %v2115_v45 = vadd.f32 (%p1903_p4), %v2081_v17, %v1059_v33  ;;  %1780 = vpow2.f32 (%p1903_p4), %v1123_v38  ;;  %v1038_v48 = vld [vmem:[#allocation2 + $0x48] sm:$0xff] (%p1903_p4) }
 0x15c   : > { %v980_v52 = vadd.f32 %v1727_v46, %v1663_v43  ;;  %v1730_v53 = vadd.f32 %v1729_v51, %v1728_v47  ;;  %v1129_v43 = vmul.f32 (%p1903_p4), 1.442695, %v1110_v37  ;;  %v1111_v46 = vmin.f32 (%p1903_p4), %v2106_v40, 0.0  ;;  %v1037_v47 = vld [vmem:[#allocation2 + $0x40] sm:$0xff] (%p1903_p4) }
 0x15d   : > { %1782 = vpow2.f32 (%p1903_p4), %v1125_v39  ;;  %vm1095_vm4 = vcmp.gt.f32.partialorder (%p1903_p4), %v2106_v40, 0.0  ;;  %vm1096_vm5 = vcmp.gt.f32.partialorder (%p1903_p4), %v2109_v41, 0.0  ;;  %vm1097_vm6 = vcmp.gt.f32.partialorder (%p1903_p4), %v2112_v44, 0.0 }
 0x15e   : > { %v1006_v55 = vadd.f32 %v980_v52, %v540_v49  ;;  %v983_v56 = vadd.f32 %v1730_v53, %v1666_v50  ;;  %v1112_v49 = vmin.f32 (%p1903_p4), %v2109_v41, 0.0  ;;  %1784 = vpow2.f32 (%p1903_p4), %v1127_v42 }
 0x15f   : > { %v1667_v57 = vpop.f32.mrb[28].mxu0  ;;  %v1039_v50 = vld [vmem:[#allocation2 + $0x50] sm:$0xff] (%p1903_p4)  ;;  %v1131_v51 = vmul.f32 (%p1903_p4), 1.442695, %v1111_v46  ;;  %v1113_v52 = vmin.f32 (%p1903_p4), %v2112_v44, 0.0  ;;  %v1114_v53 = vmin.f32 (%p1903_p4), %v2115_v45, 0.0  ;;  %1786 = vpow2.f32 (%p1903_p4), %v1129_v43 }
 0x160   : > { %1022 = vst [vmem:[#allocation2 + $0x60] sm:$0xff] %v1006_v55  ;;  %v1007_v58 = vadd.f32 %v983_v56, %v541_v54  ;;  %v1731_v59 = vpop.f32.mrb[28].mxu1  ;;  %v1668_v60 = vpop.f32.mrb[29].mxu0  ;;  %v1133_v55 = vmul.f32 (%p1903_p4), 1.442695, %v1112_v49  ;;  %v1060_v56 = vmul.f32 (%p1903_p4), %v2074_v14, %v1037_v47  ;;  %vm1098_vm7 = vcmp.gt.f32.partialorder (%p1903_p4), %v2115_v45, 0.0 }
 0x161   : > { %v1669_v61 = vadd.f32 %v1668_v60, %v1667_v57  ;;  %v1732_v62 = vpop.f32.mrb[29].mxu1  ;;  %v1670_v63 = vpop.f32.mrb[30].mxu0  ;;  %v1040_v54 = vld [vmem:[#allocation2 + $0x58] sm:$0xff] (%p1903_p4)  ;;  %v1061_v57 = vmul.f32 (%p1903_p4), %v2074_v14, %v1038_v48  ;;  %1788 = vpow2.f32 (%p1903_p4), %v1131_v51  ;;  %v1135_v60 = vmul.f32 (%p1903_p4), 1.442695, %v1113_v52 }
 0x162   : > { %1023 = vst [vmem:[#allocation2 + $0x68] sm:$0xff] %v1007_v58  ;;  %v1733_v0 = vadd.f32 %v1732_v62, %v1731_v59  ;;  %v1734_v1 = vpop.f32.mrb[30].mxu1  ;;  %v1671_v2 = vpop.f32.mrb[31].mxu0  ;;  %v1062_v62 = vmul.f32 (%p1903_p4), %v2074_v14, %v1039_v50  ;;  %1790 = vpow2.f32 (%p1903_p4), %v1133_v55 }
 0x163   : > { %v1672_v4 = vadd.f32 %v1671_v2, %v1670_v63  ;;  %v1735_v5 = vpop.f32.mrb[31].mxu1  ;;  %v2127_v63 = vadd.f32 (%p1903_p4), %v2081_v17, %v1060_v56  ;;  %1792 = vpow2.f32 (%p1903_p4), %v1135_v60 }
 0x164   : > { %v988_v6 = vadd.f32 %v1733_v0, %v1669_v61  ;;  %v1736_v7 = vadd.f32 %v1735_v5, %v1734_v1  ;;  %1028 = sbr.rel (!%p1903_p4) target bundleno = 395 (0x18b), region = 44  ;;  %v1137_v61 = vmul.f32 (%p1903_p4), 1.442695, %v1114_v53  ;;  %v2130_v0 = vadd.f32 (%p1903_p4), %v2081_v17, %v1061_v57 }
 0x165   : > { %v1063_v1 = vmul.f32 (%p1903_p4), %v2074_v14, %v1040_v54  ;;  %v2134_v2 = vadd.f32 (%p1903_p4), %v2081_v17, %v1062_v62  ;;  %v1115_v5 = vmin.f32 (%p1903_p4), %v2127_v63, 0.0  ;;  %v1781_v13 = vpop.eup (%p1903_p4), %1780  ;;  %vm1099_vm8 = vcmp.gt.f32.partialorder (%p1903_p4), %v2127_v63, 0.0 }
 0x166   : > { %v1008_v9 = vadd.f32 %v988_v6, %v542_v3  ;;  %v991_v10 = vadd.f32 %v1736_v7, %v1672_v4  ;;  %1794 = vpow2.f32 (%p1903_p4), %v1137_v61  ;;  %v1116_v6 = vmin.f32 (%p1903_p4), %v2130_v0, 0.0 }
 0x167   : > { %v1041_v58 = vld [vmem:[#allocation2 + $0x60] sm:$0xff] (%p1903_p4)  ;;  %v2144_v7 = vadd.f32 (%p1903_p4), %v2081_v17, %v1063_v1  ;;  %v1783_v19 = vpop.eup (%p1903_p4), %1782  ;;  %v1512_v20 = vadd.f32 (%p1903_p4), -1.0, %v1781_v13  ;;  %vm1100_vm9 = vcmp.gt.f32.partialorder (%p1903_p4), %v2130_v0, 0.0  ;;  %vm1101_vm10 = vcmp.gt.f32.partialorder (%p1903_p4), %v2134_v2, 0.0 }
 0x168   : > { %1024 = vst [vmem:[#allocation2 + $0x70] sm:$0xff] %v1008_v9  ;;  %v1009_v11 = vadd.f32 %v991_v10, %v543_v8  ;;  %v1064_v3 = vmul.f32 (%p1903_p4), %v2074_v14, %v1041_v58  ;;  %v1117_v8 = vmin.f32 (%p1903_p4), %v2134_v2, 0.0  ;;  %v1139_v10 = vmul.f32 (%p1903_p4), 1.442695, %v1115_v5  ;;  %v1785_v22 = vpop.eup (%p1903_p4), %1784 }
 0x169   : > { %v1042_v59 = vld [vmem:[#allocation2 + $0x68] sm:$0xff] (%p1903_p4)  ;;  %v1141_v15 = vmul.f32 (%p1903_p4), 1.442695, %v1116_v6  ;;  %v1118_v16 = vmin.f32 (%p1903_p4), %v2144_v7, 0.0  ;;  %v1513_v23 = vadd.f32 (%p1903_p4), -1.0, %v1783_v19  ;;  %v1787_v28 = vpop.eup (%p1903_p4), %1786  ;;  %v1171_v29 = vsel (%p1903_p4), %vm1091_vm0, %v2086_v25, %v1512_v20 }
 0x16a   : > { %1025 = vst [vmem:[#allocation2 + $0x78] sm:$0xff] %v1009_v11  ;;  %v1065_v4 = vmul.f32 (%p1903_p4), %v2074_v14, %v1042_v59  ;;  %v2149_v11 = vadd.f32 (%p1903_p4), %v2081_v17, %v1064_v3  ;;  %v1143_v18 = vmul.f32 (%p1903_p4), 1.442695, %v1117_v8  ;;  %1796 = vpow2.f32 (%p1903_p4), %v1139_v10 }
 0x16b   : > { %1798 = vpow2.f32 %v1141_v15  ;;  %v1145_v24 = vmul.f32 1.442695, %v1118_v16  ;;  %v1514_v32 = vadd.f32 -1.0, %v1785_v22  ;;  %v1789_v35 = vpop.eup %1788  ;;  %v1172_v36 = vsel %vm1092_vm1, %v2089_v26, %v1513_v23 }
 0x16c   : > { %v2152_v12 = vadd.f32 %v2081_v17, %v1065_v4  ;;  %v1119_v27 = vmin.f32 %v2149_v11, 0.0  ;;  %1800 = vpow2.f32 %v1143_v18  ;;  %v1515_v37 = vadd.f32 -1.0, %v1787_v28  ;;  %v1791_v39 = vpop.eup %1790 }
 0x16d   : > { %1802 = vpow2.f32 %v1145_v24  ;;  %v1565_v42 = vpack.c.bf16 %v1172_v36, %v1171_v29  ;;  %v1173_v25 = vsel %vm1093_vm2, %v2094_v30, %v1514_v32  ;;  %v1516_v43 = vadd.f32 -1.0, %v1789_v35  ;;  %v1793_v47 = vpop.eup %1792 }
 0x16e   : > { %v1120_v33 = vmin.f32 %v2152_v12, 0.0  ;;  %v1147_v38 = vmul.f32 1.442695, %v1119_v27  ;;  %v1174_v48 = vsel %vm1094_vm3, %v2097_v31, %v1515_v37  ;;  %v1517_v49 = vadd.f32 -1.0, %v1791_v39 }
 0x16f   : > { %v1043_v9 = vld [vmem:[#allocation2 + $0x70] sm:$0xff]  ;;  %1566 = vst [vmem:[%s1899_s18] sm:$0xff] %v1565_v42   ;;  %v1570_v51 = vpack.c.bf16 %v1174_v48, %v1173_v25  ;;  %v1175_v30 = vsel %vm1095_vm4, %v2106_v40, %v1516_v43  ;;  %v1518_v52 = vadd.f32 -1.0, %v1793_v47  ;;  %vm1102_vm11 = vcmp.gt.f32.partialorder %v2144_v7, 0.0 }
 0x170   : > { %v1066_v21 = vmul.f32 %v2074_v14, %v1043_v9  ;;  %v1149_v46 = vmul.f32 1.442695, %v1120_v33  ;;  %1804 = vpow2.f32 %v1147_v38  ;;  %v1795_v50 = vpop.eup %1794  ;;  %v1176_v53 = vsel %vm1096_vm5, %v2109_v41, %v1517_v49 }
 0x171   : > { %v1044_v34 = vld [vmem:[#allocation2 + $0x78] sm:$0xff]  ;;  %v1519_v54 = vadd.f32 -1.0, %v1795_v50  ;;  %1602 = vst [vmem:[%s1899_s18 + $0x8] sm:$0xff] %v1570_v51   ;;  %v1177_v56 = vsel %vm1097_vm6, %v2112_v44, %v1518_v52  ;;  %vm1103_vm12 = vcmp.gt.f32.partialorder %v2149_v11, 0.0  ;;  %vm1104_vm15 = vcmp.gt.f32.partialorder %v2152_v12, 0.0 }
 0x172   : > { %v1067_v26 = vmul.f32 %v2074_v14, %v1044_v34  ;;  %1806 = vpow2.f32 %v1149_v46  ;;  %v1089_v31 = vadd.f32 %v2081_v17, %v1066_v21  ;;  %v1575_v14 = vpack.c.bf16 %v1176_v53, %v1175_v30 }
 0x173   : > { %v1178_v40 = vsel %vm1098_vm7, %v2115_v45, %v1519_v54 }
 0x174   : > { %v1090_v55 = vadd.f32 %v2081_v17, %v1067_v26  ;;  %v1121_v57 = vmin.f32 %v1089_v31, 0.0  ;;  %v1797_v58 = vpop.eup %1796  ;;  %1603 = vst [vmem:[%s1899_s18 + $0x10] sm:$0xff] %v1575_v14   ;;  %v1580_v41 = vpack.c.bf16 %v1178_v40, %v1177_v56  ;;  %vm1105_vm13 = vcmp.gt.f32.partialorder %v1089_v31, 0.0 }
 0x175   : > { %v1799_v60 = vpop.eup %1798  ;;  %v1520_v17 = vadd.f32 -1.0, %v1797_v58 }
 0x176   : > { %v1122_v59 = vmin.f32 %v1090_v55, 0.0  ;;  %v1151_v61 = vmul.f32 1.442695, %v1121_v57  ;;  %v1801_v62 = vpop.eup %1800  ;;  %1604 = vst [vmem:[%s1899_s18 + $0x18] sm:$0xff] %v1580_v41   ;;  %v1521_v1 = vadd.f32 -1.0, %v1799_v60  ;;  %vm1106_vm14 = vcmp.gt.f32.partialorder %v1090_v55, 0.0 }
 0x177   : > { %v1803_v3 = vpop.eup %1802  ;;  %v1179_v45 = vsel %vm1099_vm8, %v2127_v63, %v1520_v17  ;;  %v1522_v4 = vadd.f32 -1.0, %v1801_v62 }
 0x178   : > { %v1153_v44 = vmul.f32 1.442695, %v1122_v59  ;;  %1808 = vpow2.f32 %v1151_v61  ;;  %v1180_v5 = vsel %vm1100_vm9, %v2130_v0, %v1521_v1  ;;  %v1523_v6 = vadd.f32 -1.0, %v1803_v3 }
 0x179   : > { %v1585_v9 = vpack.c.bf16 %v1180_v5, %v1179_v45  ;;  %v1181_v10 = vsel %vm1101_vm10, %v2134_v2, %v1522_v4 }
 0x17a   : > { %1810 = vpow2.f32 %v1153_v44  ;;  %v1805_v8 = vpop.eup %1804  ;;  %v1182_v15 = vsel %vm1102_vm11, %v2144_v7, %v1523_v6 }
 0x17b   : > { %v1524_v63 = vadd.f32 -1.0, %v1805_v8  ;;  %1605 = vst [vmem:[%s1899_s18 + $0x20] sm:$0xff] %v1585_v9   ;;  %v1590_v16 = vpack.c.bf16 %v1182_v15, %v1181_v10 }
 0x17c   : > { %v1807_v13 = vpop.eup %1806 }
 0x17d   : > { %v1525_v18 = vadd.f32 -1.0, %v1807_v13  ;;  %v1183_v0 = vsel %vm1103_vm12, %v2149_v11, %v1524_v63  ;;  %1606 = vst [vmem:[%s1899_s18 + $0x28] sm:$0xff] %v1590_v16  }
 0x17f   : > { %v1184_v19 = vsel %vm1104_vm15, %v2152_v12, %v1525_v18 }
 0x180   : > { %v1595_v20 = vpack.c.bf16 %v1184_v19, %v1183_v0 }
 0x182   : > { %1607 = vst [vmem:[%s1899_s18 + $0x30] sm:$0xff] %v1595_v20   ;;  %v1809_v2 = vpop.eup %1808 }
 0x183   : > { %v1526_v22 = vadd.f32 -1.0, %v1809_v2 }
 0x184   : > { %v1811_v21 = vpop.eup %1810 }
 0x185   : > { %v1527_v7 = vadd.f32 -1.0, %v1811_v21  ;;  %v1185_v23 = vsel %vm1105_vm13, %v1089_v31, %v1526_v22 }
 0x187   : > { %v1186_v24 = vsel %vm1106_vm14, %v1090_v55, %v1527_v7 }
 0x188   : > { %v1600_v27 = vpack.c.bf16 %v1186_v24, %v1185_v23 }
 0x18a   : > { %1608 = vst [vmem:[%s1899_s18 + $0x38] sm:$0xff] %v1600_v27  }
 0x18b PF: > { %s21_s23 = sadd.s32 1, %s1832_s23  }
 0x18c   : > { %p18_p5 = scmp.ge.s32.totalorder %s21_s23, 6  }
 0x18e   :  { %20 = sbr.rel (!%p18_p5) target bundleno = 16 (0x10), region = 77 }

// kernel: _lambda_.8
= control target key start
LH: loop header
LB: loop body
LE: loop exit
PB: predicated region body
PF: predicated region fallthrough
CT: control target
= control target key end

     0   :  { %s726_s9 = smov 0   ;;  %s784_s0 = inlined_call_operand.vmem [shape: bf16[256,128], index: 0, kind: input, shape index: {}]   ;;  %s785_s1 = inlined_call_operand.vmem [shape: bf16[128,128], index: 1, kind: input, shape index: {}]   ;;  %s786_s2 = inlined_call_operand.vmem [shape: bf16[256,128], index: 2, kind: output, shape index: {}]  }
   0x1 LB: > { %s509_s10 = sadd.s32 4294967295, %s709_s9   ;;  %p513_p0 = scmp.ge.s32.totalorder %s709_s9, 1  ;;  %s709_s9 = sphi %s726_s9, %s12_s9  }
   0x2   : > { %p113_p1 = scmp.lt.s32.totalorder %s709_s9, 3 }
   0x4   : > { %p114_p2 = pnand %p513_p0, %p113_p1 }
   0x5   : > { %v687_v0 = vld [vmem:[%s785_s1] sm:$0xff] (!%p114_p2)   ;;  %s514_s13 = sshll.u32 (!%p114_p2), %s509_s10, 4  ;;  %v688_v1 = vld [vmem:[%s785_s1 + $0x8] sm:$0xff] (!%p114_p2)   ;;  %v689_v2 = vld [vmem:[%s785_s1 + $0x10] sm:$0xff] (!%p114_p2)  }
   0x6   : > { %117 = sbr.rel (%p114_p2) target bundleno = 264 (0x108), region = 28  ;;  %p136_p3 = scmp.lt.s32.totalorder (!%p114_p2), %s514_s13, 31  ;;  %631 = vmatprep.subr.bf16.mxu0 (!%p114_p2), %v687_v0  ;;  %663 = vmatprep.subr.bf16.mxu1 (!%p114_p2), %v687_v0  ;;  %v690_v3 = vld [vmem:[%s785_s1 + $0x18] sm:$0xff] (!%p114_p2)   ;;  %v691_v6 = vld [vmem:[%s785_s1 + $0x20] sm:$0xff] (!%p114_p2)   ;;  %v692_v7 = vld [vmem:[%s785_s1 + $0x28] sm:$0xff] (!%p114_p2)  }
   0x7   : > { %632 = vmatpush3.bf16.msra.mxu0 (!%p114_p2), %v687_v0  ;;  %671 = vmatpush3.bf16.msra.mxu1 (!%p114_p2), %v687_v0  ;;  %v693_v8 = vld [vmem:[%s785_s1 + $0x30] sm:$0xff] (!%p114_p2)   ;;  %v694_v9 = vld [vmem:[%s785_s1 + $0x38] sm:$0xff] (!%p114_p2)  }
   0x8   : > { %633 = vmatprep.subr.bf16.mxu0 (!%p114_p2), %v688_v1  ;;  %664 = vmatprep.subr.bf16.mxu1 (!%p114_p2), %v688_v1 }
   0xb   : > { %634 = vmatpush3.bf16.msra.mxu0 (!%p114_p2), %v688_v1  ;;  %672 = vmatpush3.bf16.msra.mxu1 (!%p114_p2), %v688_v1 }
   0xc   : > { %635 = vmatprep.subr.bf16.mxu0 (!%p114_p2), %v689_v2  ;;  %665 = vmatprep.subr.bf16.mxu1 (!%p114_p2), %v689_v2 }
   0xd   : > { %s788_s13 = smov (!%p136_p3, %s514_s13), 31 }
   0xe   : > { %s515_s18 = sshll.u32 %s788_s13, 2 }
   0xf   : > { %s751_s21 = scalar_lea.vmem %s784_s0, %s515_s18  ;;  %636 = vmatpush3.bf16.msra.mxu0 %v689_v2  ;;  %673 = vmatpush3.bf16.msra.mxu1 %v689_v2  ;;  %s145_s6 = scalar_lea.vmem %s786_s2, %s515_s18 }
  0x10   : > { %v695_v4 = vld [vmem:[%s751_s21] sm:$0xff]   ;;  %637 = vmatprep.subr.bf16.mxu0 %v690_v3  ;;  %666 = vmatprep.subr.bf16.mxu1 %v690_v3  ;;  %v697_v10 = vld [vmem:[%s751_s21 + $0x8] sm:$0xff]   ;;  %v699_v12 = vld [vmem:[%s751_s21 + $0x10] sm:$0xff]  }
  0x11   : > { %v696_v5 = vld [vmem:[%s751_s21 + $0x20] sm:$0xff]   ;;  %647 = vmatprep.mubr.bf16.mxu0 %v695_v4  ;;  %v698_v11 = vld [vmem:[%s751_s21 + $0x28] sm:$0xff]   ;;  %v700_v13 = vld [vmem:[%s751_s21 + $0x30] sm:$0xff]  }
  0x12   : > { %655 = vmatprep.mubr.bf16.mxu1 %v696_v5  ;;  %v701_v14 = vld [vmem:[%s751_s21 + $0x18] sm:$0xff]  }
  0x13   : > { %638 = vmatpush3.bf16.msra.mxu0 %v690_v3  ;;  %674 = vmatpush3.bf16.msra.mxu1 %v690_v3  ;;  %v702_v15 = vld [vmem:[%s751_s21 + $0x38] sm:$0xff]  }
  0x14   : > { %639 = vmatprep.subr.bf16.mxu0 %v691_v6  ;;  %667 = vmatprep.subr.bf16.mxu1 %v691_v6 }
  0x17   : > { %640 = vmatpush3.bf16.msra.mxu0 %v691_v6  ;;  %675 = vmatpush3.bf16.msra.mxu1 %v691_v6 }
  0x18   : > { %641 = vmatprep.subr.bf16.mxu0 %v692_v7  ;;  %668 = vmatprep.subr.bf16.mxu1 %v692_v7 }
  0x1b   : > { %642 = vmatpush3.bf16.msra.mxu0 %v692_v7  ;;  %676 = vmatpush3.bf16.msra.mxu1 %v692_v7 }
  0x1c   : > { %643 = vmatprep.subr.bf16.mxu0 %v693_v8  ;;  %669 = vmatprep.subr.bf16.mxu1 %v693_v8 }
  0x1f   : > { %644 = vmatpush3.bf16.msra.mxu0 %v693_v8  ;;  %677 = vmatpush3.bf16.msra.mxu1 %v693_v8 }
  0x20   : > { %645 = vmatprep.subr.bf16.mxu0 %v694_v9  ;;  %670 = vmatprep.subr.bf16.mxu1 %v694_v9 }
  0x23   : > { %646 = vmatpush3.bf16.msra.mxu0 %v694_v9  ;;  %678 = vmatpush3.bf16.msra.mxu1 %v694_v9 }
  0x26   : > { %648 = vmatmul.mubr.bf16.vlgmr.msra.gmra.mrb[0].mxu0 %v697_v10  ;;  %656 = vmatmul.mubr.bf16.vlgmr.msra.gmra.mrb[0].mxu1 %v698_v11 }
  0x27   : > { %651 = vmatprep.mubr.bf16.mxu0 %v699_v12  ;;  %659 = vmatprep.mubr.bf16.mxu1 %v700_v13 }
  0x2e   : > { %652 = vmatmul.mubr.bf16.gmra.mrb[4].mxu0 %v701_v14  ;;  %660 = vmatmul.mubr.bf16.gmra.mrb[4].mxu1 %v702_v15 }
  0xf9   : > { %v649_v16 = vpop.f32.mrb[0].mxu0  ;;  %v657_v17 = vpop.f32.mrb[0].mxu1 }
  0xfa   : > { %v310_v18 = vpop.f32.mrb[1].mxu0  ;;  %v342_v19 = vpop.f32.mrb[1].mxu1 }
  0xfb   : > { %v650_v20 = vpop.f32.mrb[2].mxu0  ;;  %v658_v21 = vpop.f32.mrb[2].mxu1 }
  0xfc   : > { %v576_v22 = vpack.c.bf16 %v650_v20, %v649_v16  ;;  %v596_v23 = vpack.c.bf16 %v658_v21, %v657_v17  ;;  %v313_v24 = vpop.f32.mrb[3].mxu0  ;;  %v345_v25 = vpop.f32.mrb[3].mxu1 }
  0xfd   : > { %v571_v26 = vpack.c.bf16 %v313_v24, %v310_v18  ;;  %v591_v27 = vpack.c.bf16 %v345_v25, %v342_v19 }
  0xfe   : > { %608 = vst [vmem:[%s145_s6 + $0x8] sm:$0xff] %v576_v22   ;;  %612 = vst [vmem:[%s145_s6 + $0x28] sm:$0xff] %v596_v23  }
  0xff   : > { %572 = vst [vmem:[%s145_s6] sm:$0xff] %v571_v26   ;;  %611 = vst [vmem:[%s145_s6 + $0x20] sm:$0xff] %v591_v27  }
 0x101   : > { %v653_v28 = vpop.f32.mrb[4].mxu0  ;;  %v661_v29 = vpop.f32.mrb[4].mxu1 }
 0x102   : > { %v326_v30 = vpop.f32.mrb[5].mxu0  ;;  %v358_v31 = vpop.f32.mrb[5].mxu1 }
 0x103   : > { %v654_v32 = vpop.f32.mrb[6].mxu0  ;;  %v662_v33 = vpop.f32.mrb[6].mxu1 }
 0x104   : > { %v586_v34 = vpack.c.bf16 %v654_v32, %v653_v28  ;;  %v606_v35 = vpack.c.bf16 %v662_v33, %v661_v29  ;;  %v329_v36 = vpop.f32.mrb[7].mxu0  ;;  %v361_v37 = vpop.f32.mrb[7].mxu1 }
 0x105   : > { %v581_v38 = vpack.c.bf16 %v329_v36, %v326_v30  ;;  %v601_v39 = vpack.c.bf16 %v361_v37, %v358_v31 }
 0x106   : > { %610 = vst [vmem:[%s145_s6 + $0x18] sm:$0xff] %v586_v34   ;;  %614 = vst [vmem:[%s145_s6 + $0x38] sm:$0xff] %v606_v35  }
 0x107   : > { %609 = vst [vmem:[%s145_s6 + $0x10] sm:$0xff] %v581_v38   ;;  %613 = vst [vmem:[%s145_s6 + $0x30] sm:$0xff] %v601_v39  }
 0x108 PF: > { %s12_s9 = sadd.s32 1, %s709_s9  }
 0x109   : > { %p9_p4 = scmp.ge.s32.totalorder %s12_s9, 4  }
 0x10b   :  { %11 = sbr.rel (!%p9_p4) target bundleno = 1 (0x1), region = 58 }

// kernel: _lambda_.11
= control target key start
LH: loop header
LB: loop body
LE: loop exit
PB: predicated region body
PF: predicated region fallthrough
CT: control target
= control target key end

     0   :  { %s1809_s0 = inlined_call_operand.vmem [shape: s32[4], index: 0, kind: input, shape index: {}]   ;;  %s1810_s1 = inlined_call_operand.vmem [shape: s32[8,2048], index: 1, kind: input, shape index: {}]   ;;  %s1811_s2 = inlined_call_operand.vmem [shape: bf16[2048,128], index: 2, kind: input, shape index: {}]   ;;  %s1812_s3 = inlined_call_operand.vmem [shape: f32[1,128], index: 3, kind: input, shape index: {}]   ;;  %s1813_s4 = inlined_call_operand.vmem [shape: f32[1,128], index: 4, kind: input, shape index: {}]   ;;  %s1814_s5 = inlined_call_operand.vmem [shape: f32[256,128], index: 5, kind: output, shape index: {}]  }
   0x1   :  { %s10_s20 = sshll.u32 %s1809_s0, 4  ;;  %s11_s20 = int_to_ptr.vmem [resolvable:$true] %s10_s20 }
   0x2   :  { %s1525_s21 = scalar_lea.vmem %s11_s20, 16  ;;  %p1530_p1 = scmp.lt.s32.totalorder %s11_s20, %s11_s20 }
   0x3   :  { %p1526_p0 = scmp.ne.s32.totalorder %s11_s20, %s1525_s21  ;;  %p1531_p2 = scmp.lt.s32.totalorder %s1525_s21, %s1525_s21 }
   0x5   :  { %p1532_p3 = por %p1531_p2, %p1530_p1 }
   0x7   :  { %p1533_p4 = pnand %p1532_p3, %p1526_p0 }
   0x9   :  { %1536 = shalt.err (!%p1533_p4)  }
   0xa   :  { %s1547_s22 = smov [#allocation4]  }
   0xb   :  { %13 = dma.vmem_to_smem %s11_s20, 16, %s1547_s22, [#allocation3] }
   0xc   :  { %1541 = dma.done.wait [#allocation3], 16 }
   0xd   :  { %1542 = vsyncadd [#allocation3], 4294967280 }
   0xe   :  { %15 = sfence }
   0xf   :  { %s1583_s23 = smov 0  }
  0x10 LB: > { %s1589_s0 = sadd.s32 4294967295, %s1545_s23   ;;  %p1182_p5 = scmp.ge.s32.totalorder %s1545_s23, 1  ;;  %s1545_s23 = sphi %s1583_s23, %s21_s23  }
  0x11   : > { %p183_p6 = scmp.lt.s32.totalorder %s1545_s23, 5 }
  0x13   : > { %p184_p7 = pnand %p1182_p5, %p183_p6 }
  0x14   : > { %s1183_s24 = sshll.u32 (!%p184_p7), %s1589_s0, 2  ;;  %s1185_s25 = sshll.u32 (!%p184_p7), %s1589_s0, 6 }
  0x15   : > { %187 = sbr.rel (%p184_p7) target bundleno = 375 (0x177), region = 36  ;;  %p216_p8 = scmp.lt.s32.totalorder (!%p184_p7), %s1183_s24, 15 }
  0x16   : > { %p222_p9 = scmp.lt.s32.totalorder (!%p184_p7), %s1185_s25, 255  ;;  %s227_s26 = sld [smem:[#allocation4 + %s1589_s0]] (!%p184_p7) }
  0x17   : > { %s236_s27 = sld [smem:[#allocation4 + %s1589_s0]] (!%p184_p7)  ;;  %s1189_s29 = sadd.s32 (!%p184_p7), 4294967295, %s1589_s0 }
  0x18   : > { %p238_p10 = scmp.gt.s32.totalorder (!%p184_p7), %s1189_s29, 0  ;;  %s241_s13 = sadd.s32 (!%p184_p7), 1, %s1589_s0 }
  0x19   : > { %p242_p12 = scmp.lt.s32.totalorder (!%p184_p7), %s241_s13, 3  ;;  %p245_p13 = scmp.eq.s32.totalorder (!%p184_p7), %s1589_s0, 0 }
  0x1a   : > { %p248_p2 = scmp.eq.s32.totalorder (!%p184_p7), %s1589_s0, 3 }
  0x1c   : > { %s1817_s24 = smov (!%p216_p8, %s1183_s24), 15  ;;  %s1819_s25 = smov (!%p222_p9, %s1185_s25), 255 }
  0x1d   : > { %s1184_s28 = sshll.u32 %s1817_s24, 3  ;;  %s1186_s8 = sshll.u32 %s1819_s25, 2 }
  0x1e   : > { %s1601_s7 = scalar_lea.vmem %s1810_s1, %s1184_s28  ;;  %s1606_s11 = scalar_lea.vmem %s1811_s2, %s1186_s8 }
  0x1f   : > { %s1187_s12 = sshll.u32 %s227_s26, 4  ;;  %s1821_s29 = smov (!%p238_p10, %s1189_s29), 0 }
  0x20   : > { %p229_p11 = scmp.lt.s32.totalorder %s1187_s12, 31  ;;  %s240_s14 = sld [smem:[#allocation4 + %s1821_s29]] }
  0x21   : > { %s1825_s13 = smov (!%p242_p12, %s241_s13), 3 }
  0x22   : > { %s1823_s12 = smov (!%p229_p11, %s1187_s12), 31  ;;  %s244_s19 = sld [smem:[#allocation4 + %s1825_s13]] }
  0x23   : > { %s1188_s15 = sshll.u32 %s1823_s12, 3 }
  0x24   : > { %s1612_s18 = scalar_lea.vmem %s1814_s5, %s1188_s15 }
  0x26   : > { %p246_p0 = scmp.ne.s32.totalorder %s240_s14, %s236_s27 }
  0x28   : > { %p247_p1 = por %p246_p0, %p245_p13  ;;  %p249_p3 = scmp.ne.s32.totalorder %s244_s19, %s236_s27 }
  0x29   : > { %v1548_v0 = vmov (%p247_p1), 0.0  }
  0x2a   : > { %p1616_p4 = por %p249_p3, %p248_p2  ;;  %253 = sbr.rel (!%p247_p1) target bundleno = 50 (0x32), region = 40  ;;  %254 = vst [vmem:[#allocation2] sm:$0xff] (%p247_p1), %v1548_v0  ;;  %255 = vst [vmem:[#allocation2 + $0x8] sm:$0xff] (%p247_p1), %v1548_v0 }
  0x2b   : > { %256 = vst [vmem:[#allocation2 + $0x10] sm:$0xff] (%p247_p1), %v1548_v0  ;;  %257 = vst [vmem:[#allocation2 + $0x18] sm:$0xff] (%p247_p1), %v1548_v0 }
  0x2c   : > { %258 = vst [vmem:[#allocation2 + $0x20] sm:$0xff] (%p247_p1), %v1548_v0  ;;  %259 = vst [vmem:[#allocation2 + $0x28] sm:$0xff] (%p247_p1), %v1548_v0 }
  0x2d   : > { %260 = vst [vmem:[#allocation2 + $0x30] sm:$0xff] (%p247_p1), %v1548_v0  ;;  %261 = vst [vmem:[#allocation2 + $0x38] sm:$0xff] (%p247_p1), %v1548_v0 }
  0x2e   : > { %262 = vst [vmem:[#allocation2 + $0x40] sm:$0xff] (%p247_p1), %v1548_v0  ;;  %263 = vst [vmem:[#allocation2 + $0x48] sm:$0xff] (%p247_p1), %v1548_v0 }
  0x2f   : > { %264 = vst [vmem:[#allocation2 + $0x50] sm:$0xff] (%p247_p1), %v1548_v0  ;;  %265 = vst [vmem:[#allocation2 + $0x58] sm:$0xff] (%p247_p1), %v1548_v0 }
  0x30   : > { %266 = vst [vmem:[#allocation2 + $0x60] sm:$0xff] (%p247_p1), %v1548_v0  ;;  %267 = vst [vmem:[#allocation2 + $0x68] sm:$0xff] (%p247_p1), %v1548_v0 }
  0x31   : > { %268 = vst [vmem:[#allocation2 + $0x70] sm:$0xff] %v1548_v0  ;;  %269 = vst [vmem:[#allocation2 + $0x78] sm:$0xff] %v1548_v0 }
  0x32 PF: > { %v1493_v1 = vld [vmem:[%s1606_s11 + $0x40] sm:$0xff]   ;;  %v1497_v5 = vld [vmem:[%s1606_s11 + $0x48] sm:$0xff]   ;;  %v1501_v9 = vld [vmem:[%s1606_s11 + $0x50] sm:$0xff]   ;;  %v271_v20 = vlaneseq  ;;  %v1549_v47 = vmov 1.0|1.0  }
  0x33   : > { %v1494_v2 = vld [vmem:[%s1606_s11 + $0xc0] sm:$0xff]   ;;  %1354 = vmatprep.subr.bf16.mxu0 %v1493_v1  ;;  %v1498_v6 = vld [vmem:[%s1606_s11 + $0xc8] sm:$0xff]   ;;  %v1502_v10 = vld [vmem:[%s1606_s11 + $0xd0] sm:$0xff]  }
  0x34   : > { %v1495_v3 = vld [vmem:[%s1606_s11] sm:$0xff]   ;;  %1418 = vmatprep.subr.bf16.mxu1 %v1494_v2  ;;  %v1499_v7 = vld [vmem:[%s1606_s11 + $0x8] sm:$0xff]   ;;  %v1503_v11 = vld [vmem:[%s1606_s11 + $0x10] sm:$0xff]   ;;  %v1643_v25 = vshrl.u32 %v271_v20, 7 }
  0x35   : > { %v1496_v4 = vld [vmem:[%s1606_s11 + $0x80] sm:$0xff]   ;;  %1355 = vmatpush3.bf16.msra.mxu0 %v1495_v3  ;;  %v1500_v8 = vld [vmem:[%s1606_s11 + $0x88] sm:$0xff]   ;;  %v1504_v12 = vld [vmem:[%s1606_s11 + $0x90] sm:$0xff]  }
  0x36   : > { %1419 = vmatpush3.bf16.msra.mxu1 %v1496_v4  ;;  %1356 = vmatprep.subr.bf16.mxu0 %v1497_v5  ;;  %v1505_v13 = vld [vmem:[%s1606_s11 + $0x58] sm:$0xff]   ;;  %v1509_v17 = vld [vmem:[%s1606_s11 + $0x60] sm:$0xff]   ;;  %v1513_v22 = vld [vmem:[%s1606_s11 + $0x68] sm:$0xff]   ;;  %v294_v30 = vsub.s32 1, %v1643_v25  ;;  %v302_v32 = vsub.s32 3, %v1643_v25  ;;  %v290_v34 = vsub.s32 0, %v1643_v25 }
  0x37   : > { %1420 = vmatprep.subr.bf16.mxu1 %v1498_v6  ;;  %v1506_v14 = vld [vmem:[%s1606_s11 + $0xd8] sm:$0xff]   ;;  %v1510_v18 = vld [vmem:[%s1606_s11 + $0xe0] sm:$0xff]   ;;  %v1514_v23 = vld [vmem:[%s1606_s11 + $0xe8] sm:$0xff]   ;;  %v298_v36 = vsub.s32 2, %v1643_v25  ;;  %v273_v39 = vadd.s32 8, %v1643_v25  ;;  %v274_v41 = vadd.s32 16, %v1643_v25 }
  0x38   : > { %v1507_v15 = vld [vmem:[%s1606_s11 + $0x18] sm:$0xff]   ;;  %v1511_v19 = vld [vmem:[%s1606_s11 + $0x20] sm:$0xff]   ;;  %v1515_v24 = vld [vmem:[%s1606_s11 + $0x28] sm:$0xff]   ;;  %v275_v42 = vadd.s32 24, %v1643_v25  ;;  %v276_v48 = vadd.s32 32, %v1643_v25  ;;  %v277_v49 = vadd.s32 40, %v1643_v25 }
  0x39   : > { %1357 = vmatpush3.bf16.msra.mxu0 %v1499_v7  ;;  %v1508_v16 = vld [vmem:[%s1606_s11 + $0x98] sm:$0xff]   ;;  %v1512_v21 = vld [vmem:[%s1606_s11 + $0xa0] sm:$0xff]   ;;  %v1516_v26 = vld [vmem:[%s1606_s11 + $0xa8] sm:$0xff]   ;;  %v278_v50 = vadd.s32 48, %v1643_v25  ;;  %v279_v51 = vadd.s32 56, %v1643_v25  ;;  %v280_v52 = vadd.s32 64, %v1643_v25 }
  0x3a   : > { %1421 = vmatpush3.bf16.msra.mxu1 %v1500_v8  ;;  %1358 = vmatprep.subr.bf16.mxu0 %v1501_v9  ;;  %v1517_v27 = vld [vmem:[%s1606_s11 + $0x70] sm:$0xff]   ;;  %v1521_v33 = vld [vmem:[%s1606_s11 + $0x78] sm:$0xff]   ;;  %v281_v53 = vadd.s32 72, %v1643_v25  ;;  %v282_v54 = vadd.s32 80, %v1643_v25  ;;  %v283_v55 = vadd.s32 88, %v1643_v25  ;;  %v284_v56 = vadd.s32 96, %v1643_v25 }
  0x3b   : > { %1422 = vmatprep.subr.bf16.mxu1 %v1502_v10  ;;  %v1518_v28 = vld [vmem:[%s1606_s11 + $0xf0] sm:$0xff]   ;;  %v1522_v35 = vld [vmem:[%s1606_s11 + $0xf8] sm:$0xff]   ;;  %v285_v57 = vadd.s32 104, %v1643_v25  ;;  %v286_v58 = vadd.s32 112, %v1643_v25  ;;  %v287_v59 = vadd.s32 120, %v1643_v25  ;;  %v528_v5 = vld [vmem:[#allocation2] sm:$0xff] }
  0x3c   : > { %v1519_v29 = vld [vmem:[%s1606_s11 + $0x30] sm:$0xff]   ;;  %v1523_v37 = vld [vmem:[%s1606_s11 + $0x38] sm:$0xff]   ;;  %v529_v10 = vld [vmem:[#allocation2 + $0x8] sm:$0xff] }
  0x3d   : > { %1359 = vmatpush3.bf16.msra.mxu0 %v1503_v11  ;;  %v1520_v31 = vld [vmem:[%s1606_s11 + $0xb0] sm:$0xff]   ;;  %v1524_v38 = vld [vmem:[%s1606_s11 + $0xb8] sm:$0xff]  }
  0x3e   : > { %1423 = vmatpush3.bf16.msra.mxu1 %v1504_v12  ;;  %1360 = vmatprep.subr.bf16.mxu0 %v1505_v13  ;;  %v270_v40 = vld [vmem:[%s1601_s7] ss:$8 sm:$0xf] }
  0x3f   : > { %1424 = vmatprep.subr.bf16.mxu1 %v1506_v14  ;;  %v1662_v43 = vrot.slane %v270_v40, %v294_v30  ;;  %v1664_v44 = vrot.slane %v270_v40, %v302_v32  ;;  %v1666_v45 = vrot.slane %v270_v40, %v290_v34  ;;  %v1668_v46 = vrot.slane %v270_v40, %v298_v36 }
  0x41   : > { %1361 = vmatpush3.bf16.msra.mxu0 %v1507_v15  ;;  %vm305_vm0 = vcmp.eq.s32.totalorder %v1643_v25, %v1662_v43  ;;  %vm309_vm1 = vcmp.eq.s32.totalorder %v273_v39, %v1662_v43  ;;  %vm307_vm2 = vcmp.eq.s32.totalorder %v1643_v25, %v1664_v44  ;;  %vm311_vm3 = vcmp.eq.s32.totalorder %v273_v39, %v1664_v44 }
  0x42   : > { %1425 = vmatpush3.bf16.msra.mxu1 %v1508_v16  ;;  %1362 = vmatprep.subr.bf16.mxu0 %v1509_v17  ;;  %vm1286_vm4 = vmpackc.low %vm309_vm1, %vm305_vm0  ;;  %vm304_vm5 = vcmp.eq.s32.totalorder %v1643_v25, %v1666_v45  ;;  %vm308_vm6 = vcmp.eq.s32.totalorder %v273_v39, %v1666_v45  ;;  %vm306_vm7 = vcmp.eq.s32.totalorder %v1643_v25, %v1668_v46 }
  0x43   : > { %1426 = vmatprep.subr.bf16.mxu1 %v1510_v18  ;;  %vm310_vm8 = vcmp.eq.s32.totalorder %v273_v39, %v1668_v46  ;;  %1287 = vmatprep.mubr.msk.bf16.mxu0 %vm1286_vm4, %v1549_v47  ;;  %vm1318_vm9 = vmpackc.low %vm311_vm3, %vm307_vm2  ;;  %vm313_vm10 = vcmp.eq.s32.totalorder %v274_v41, %v1662_v43  ;;  %vm317_vm11 = vcmp.eq.s32.totalorder %v275_v42, %v1662_v43 }
  0x44   : > { %1319 = vmatprep.mubr.msk.bf16.mxu1 %vm1318_vm9, %v1549_v47  ;;  %vm1288_vm12 = vmpackc.low %vm308_vm6, %vm304_vm5  ;;  %vm315_vm13 = vcmp.eq.s32.totalorder %v274_v41, %v1664_v44  ;;  %vm319_vm14 = vcmp.eq.s32.totalorder %v275_v42, %v1664_v44  ;;  %vm312_vm1 = vcmp.eq.s32.totalorder %v274_v41, %v1666_v45  ;;  %vm316_vm2 = vcmp.eq.s32.totalorder %v275_v42, %v1666_v45 }
  0x45   : > { %1363 = vmatpush3.bf16.msra.mxu0 %v1511_v19  ;;  %vm1320_vm15 = vmpackc.low %vm310_vm8, %vm306_vm7  ;;  %vm314_vm4 = vcmp.eq.s32.totalorder %v274_v41, %v1668_v46  ;;  %vm318_vm5 = vcmp.eq.s32.totalorder %v275_v42, %v1668_v46  ;;  %vm321_vm6 = vcmp.eq.s32.totalorder %v276_v48, %v1662_v43  ;;  %vm325_vm7 = vcmp.eq.s32.totalorder %v277_v49, %v1662_v43  ;;  %v532_v41 = vld [vmem:[#allocation2 + $0x20] sm:$0xff] }
  0x46   : > { %1427 = vmatpush3.bf16.msra.mxu1 %v1512_v21  ;;  %1364 = vmatprep.subr.bf16.mxu0 %v1513_v22  ;;  %vm1290_vm0 = vmpackc.low %vm317_vm11, %vm313_vm10  ;;  %vm323_vm9 = vcmp.eq.s32.totalorder %v276_v48, %v1664_v44  ;;  %vm327_vm10 = vcmp.eq.s32.totalorder %v277_v49, %v1664_v44 }
  0x47   : > { %1428 = vmatprep.subr.bf16.mxu1 %v1514_v23  ;;  %vm1322_vm3 = vmpackc.low %vm319_vm14, %vm315_vm13  ;;  %vm320_vm13 = vcmp.eq.s32.totalorder %v276_v48, %v1666_v45  ;;  %vm324_vm14 = vcmp.eq.s32.totalorder %v277_v49, %v1666_v45  ;;  %v530_v23 = vld [vmem:[#allocation2 + $0x10] sm:$0xff] }
  0x48   : > { %vm1292_vm8 = vmpackc.low %vm316_vm2, %vm312_vm1  ;;  %vm326_vm1 = vcmp.eq.s32.totalorder %v277_v49, %v1668_v46  ;;  %vm329_vm2 = vcmp.eq.s32.totalorder %v278_v50, %v1662_v43 }
  0x49   : > { %1365 = vmatpush3.bf16.msra.mxu0 %v1515_v24  ;;  %vm1324_vm11 = vmpackc.low %vm318_vm5, %vm314_vm4  ;;  %vm331_vm5 = vcmp.eq.s32.totalorder %v278_v50, %v1664_v44 }
  0x4a   : > { %1429 = vmatpush3.bf16.msra.mxu1 %v1516_v26  ;;  %1366 = vmatprep.subr.bf16.mxu0 %v1517_v27  ;;  %vm1296_vm4 = vmpackc.low %vm324_vm14, %vm320_vm13  ;;  %vm337_vm13 = vcmp.eq.s32.totalorder %v280_v52, %v1662_v43  ;;  %vm341_vm14 = vcmp.eq.s32.totalorder %v281_v53, %v1662_v43 }
  0x4b   : > { %1430 = vmatprep.subr.bf16.mxu1 %v1518_v28  ;;  %v531_v28 = vld [vmem:[#allocation2 + $0x18] sm:$0xff] }
  0x4d   : > { %1367 = vmatpush3.bf16.msra.mxu0 %v1519_v29 }
  0x4e   : > { %1431 = vmatpush3.bf16.msra.mxu1 %v1520_v31  ;;  %1368 = vmatprep.subr.bf16.mxu0 %v1521_v33 }
  0x4f   : > { %1432 = vmatprep.subr.bf16.mxu1 %v1522_v35 }
  0x51   : > { %1369 = vmatpush3.bf16.msra.mxu0 %v1523_v37 }
  0x52   : > { %1433 = vmatpush3.bf16.msra.mxu1 %v1524_v38 }
  0x54   : > { %1289 = vmatmul.mubr.msk.bf16.vlgmr.msra.gmra.mrb[0].mxu0 %vm1288_vm12, %v1549_v47  ;;  %vm1294_vm12 = vmpackc.low %vm325_vm7, %vm321_vm6  ;;  %vm335_vm6 = vcmp.eq.s32.totalorder %v279_v51, %v1664_v44 }
  0x55   : > { %1321 = vmatmul.mubr.msk.bf16.vlgmr.msra.gmra.mrb[0].mxu1 %vm1320_vm15, %v1549_v47  ;;  %1291 = vmatprep.mubr.msk.bf16.mxu0 %vm1290_vm0, %v1549_v47  ;;  %vm1326_vm15 = vmpackc.low %vm327_vm10, %vm323_vm9  ;;  %vm322_vm0 = vcmp.eq.s32.totalorder %v276_v48, %v1668_v46  ;;  %vm328_vm10 = vcmp.eq.s32.totalorder %v278_v50, %v1666_v45 }
  0x56   : > { %1323 = vmatprep.mubr.msk.bf16.mxu1 %vm1322_vm3, %v1549_v47  ;;  %vm333_vm3 = vcmp.eq.s32.totalorder %v279_v51, %v1662_v43  ;;  %vm1328_vm7 = vmpackc.low %vm326_vm1, %vm322_vm0  ;;  %vm339_vm1 = vcmp.eq.s32.totalorder %v280_v52, %v1664_v44 }
  0x57   : > { %vm1330_vm9 = vmpackc.low %vm335_vm6, %vm331_vm5  ;;  %vm336_vm6 = vcmp.eq.s32.totalorder %v280_v52, %v1666_v45 }
  0x5c   : > { %1293 = vmatmul.mubr.msk.bf16.gmra.mrb[4].mxu0 %vm1292_vm8, %v1549_v47  ;;  %vm1298_vm8 = vmpackc.low %vm333_vm3, %vm329_vm2  ;;  %vm343_vm2 = vcmp.eq.s32.totalorder %v281_v53, %v1664_v44 }
  0x5d   : > { %1325 = vmatmul.mubr.msk.bf16.gmra.mrb[4].mxu1 %vm1324_vm11, %v1549_v47  ;;  %1295 = vmatprep.mubr.msk.bf16.mxu0 %vm1294_vm12, %v1549_v47  ;;  %vm332_vm11 = vcmp.eq.s32.totalorder %v279_v51, %v1666_v45  ;;  %vm330_vm12 = vcmp.eq.s32.totalorder %v278_v50, %v1668_v46  ;;  %vm1334_vm5 = vmpackc.low %vm343_vm2, %vm339_vm1  ;;  %vm344_vm2 = vcmp.eq.s32.totalorder %v282_v54, %v1666_v45 }
  0x5e   : > { %1327 = vmatprep.mubr.msk.bf16.mxu1 %vm1326_vm15, %v1549_v47  ;;  %vm334_vm15 = vcmp.eq.s32.totalorder %v279_v51, %v1668_v46  ;;  %vm1300_vm0 = vmpackc.low %vm332_vm11, %vm328_vm10  ;;  %vm345_vm10 = vcmp.eq.s32.totalorder %v282_v54, %v1662_v43  ;;  %vm349_vm11 = vcmp.eq.s32.totalorder %v283_v55, %v1662_v43 }
  0x5f   : > { %vm1332_vm3 = vmpackc.low %vm334_vm15, %vm330_vm12  ;;  %vm347_vm15 = vcmp.eq.s32.totalorder %v282_v54, %v1664_v44 }
  0x64   : > { %1297 = vmatmul.mubr.msk.bf16.gmra.mrb[8].mxu0 %vm1296_vm4, %v1549_v47  ;;  %vm1302_vm4 = vmpackc.low %vm341_vm14, %vm337_vm13  ;;  %vm351_vm13 = vcmp.eq.s32.totalorder %v283_v55, %v1664_v44 }
  0x65   : > { %1329 = vmatmul.mubr.msk.bf16.gmra.mrb[8].mxu1 %vm1328_vm7, %v1549_v47  ;;  %1299 = vmatprep.mubr.msk.bf16.mxu0 %vm1298_vm8, %v1549_v47  ;;  %vm340_vm7 = vcmp.eq.s32.totalorder %v281_v53, %v1666_v45  ;;  %vm338_vm8 = vcmp.eq.s32.totalorder %v280_v52, %v1668_v46  ;;  %vm1338_vm1 = vmpackc.low %vm351_vm13, %vm347_vm15  ;;  %vm352_vm13 = vcmp.eq.s32.totalorder %v284_v56, %v1666_v45 }
  0x66   : > { %1331 = vmatprep.mubr.msk.bf16.mxu1 %vm1330_vm9, %v1549_v47  ;;  %vm342_vm9 = vcmp.eq.s32.totalorder %v281_v53, %v1668_v46  ;;  %vm1304_vm12 = vmpackc.low %vm340_vm7, %vm336_vm6  ;;  %vm353_vm6 = vcmp.eq.s32.totalorder %v284_v56, %v1662_v43  ;;  %vm357_vm7 = vcmp.eq.s32.totalorder %v285_v57, %v1662_v43 }
  0x67   : > { %vm1336_vm14 = vmpackc.low %vm342_vm9, %vm338_vm8  ;;  %vm355_vm9 = vcmp.eq.s32.totalorder %v284_v56, %v1664_v44 }
  0x6c   : > { %1301 = vmatmul.mubr.msk.bf16.gmra.mrb[12].mxu0 %vm1300_vm0, %v1549_v47  ;;  %vm1306_vm0 = vmpackc.low %vm349_vm11, %vm345_vm10  ;;  %vm359_vm10 = vcmp.eq.s32.totalorder %v285_v57, %v1664_v44 }
  0x6d   : > { %1333 = vmatmul.mubr.msk.bf16.gmra.mrb[12].mxu1 %vm1332_vm3, %v1549_v47  ;;  %1303 = vmatprep.mubr.msk.bf16.mxu0 %vm1302_vm4, %v1549_v47  ;;  %vm348_vm3 = vcmp.eq.s32.totalorder %v283_v55, %v1666_v45  ;;  %vm346_vm4 = vcmp.eq.s32.totalorder %v282_v54, %v1668_v46  ;;  %vm1342_vm15 = vmpackc.low %vm359_vm10, %vm355_vm9  ;;  %vm360_vm10 = vcmp.eq.s32.totalorder %v286_v58, %v1666_v45 }
  0x6e   : > { %1335 = vmatprep.mubr.msk.bf16.mxu1 %vm1334_vm5, %v1549_v47  ;;  %vm350_vm5 = vcmp.eq.s32.totalorder %v283_v55, %v1668_v46  ;;  %vm1308_vm8 = vmpackc.low %vm348_vm3, %vm344_vm2  ;;  %vm361_vm2 = vcmp.eq.s32.totalorder %v286_v58, %v1662_v43  ;;  %vm365_vm3 = vcmp.eq.s32.totalorder %v287_v59, %v1662_v43 }
  0x6f   : > { %vm1340_vm11 = vmpackc.low %vm350_vm5, %vm346_vm4  ;;  %vm363_vm5 = vcmp.eq.s32.totalorder %v286_v58, %v1664_v44 }
  0x74   : > { %1305 = vmatmul.mubr.msk.bf16.gmra.mrb[16].mxu0 %vm1304_vm12, %v1549_v47  ;;  %vm1310_vm12 = vmpackc.low %vm357_vm7, %vm353_vm6  ;;  %vm367_vm6 = vcmp.eq.s32.totalorder %v287_v59, %v1664_v44 }
  0x75   : > { %1337 = vmatmul.mubr.msk.bf16.gmra.mrb[16].mxu1 %vm1336_vm14, %v1549_v47  ;;  %1307 = vmatprep.mubr.msk.bf16.mxu0 %vm1306_vm0, %v1549_v47  ;;  %vm356_vm14 = vcmp.eq.s32.totalorder %v285_v57, %v1666_v45  ;;  %vm354_vm0 = vcmp.eq.s32.totalorder %v284_v56, %v1668_v46  ;;  %vm1346_vm9 = vmpackc.low %vm367_vm6, %vm363_vm5 }
  0x76   : > { %1339 = vmatprep.mubr.msk.bf16.mxu1 %vm1338_vm1, %v1549_v47  ;;  %vm358_vm1 = vcmp.eq.s32.totalorder %v285_v57, %v1668_v46  ;;  %vm1312_vm4 = vmpackc.low %vm356_vm14, %vm352_vm13 }
  0x77   : > { %vm1344_vm7 = vmpackc.low %vm358_vm1, %vm354_vm0 }
  0x7c   : > { %1309 = vmatmul.mubr.msk.bf16.gmra.mrb[20].mxu0 %vm1308_vm8, %v1549_v47  ;;  %vm1314_vm8 = vmpackc.low %vm365_vm3, %vm361_vm2 }
  0x7d   : > { %1341 = vmatmul.mubr.msk.bf16.gmra.mrb[20].mxu1 %vm1340_vm11, %v1549_v47  ;;  %1311 = vmatprep.mubr.msk.bf16.mxu0 %vm1310_vm12, %v1549_v47  ;;  %vm364_vm11 = vcmp.eq.s32.totalorder %v287_v59, %v1666_v45  ;;  %vm362_vm12 = vcmp.eq.s32.totalorder %v286_v58, %v1668_v46 }
  0x7e   : > { %1343 = vmatprep.mubr.msk.bf16.mxu1 %vm1342_vm15, %v1549_v47  ;;  %vm366_vm15 = vcmp.eq.s32.totalorder %v287_v59, %v1668_v46  ;;  %vm1316_vm13 = vmpackc.low %vm364_vm11, %vm360_vm10  ;;  %v533_v46 = vld [vmem:[#allocation2 + $0x28] sm:$0xff]  ;;  %v534_v59 = vld [vmem:[#allocation2 + $0x30] sm:$0xff] }
  0x7f   : > { %vm1348_vm14 = vmpackc.low %vm366_vm15, %vm362_vm12 }
  0x84   : > { %1313 = vmatmul.mubr.msk.bf16.gmra.mrb[24].mxu0 %vm1312_vm4, %v1549_v47 }
  0x85   : > { %1345 = vmatmul.mubr.msk.bf16.gmra.mrb[24].mxu1 %vm1344_vm7, %v1549_v47  ;;  %1315 = vmatprep.mubr.msk.bf16.mxu0 %vm1314_vm8, %v1549_v47 }
  0x86   : > { %1347 = vmatprep.mubr.msk.bf16.mxu1 %vm1346_vm9, %v1549_v47 }
  0x8c   : > { %1317 = vmatmul.mubr.msk.bf16.gmra.mrb[28].mxu0 %vm1316_vm13, %v1549_v47 }
  0x8d   : > { %1349 = vmatmul.mubr.msk.bf16.gmra.mrb[28].mxu1 %vm1348_vm14, %v1549_v47 }
 0x127   : > { %v1370_v60 = vpop.f32.mrb[0].mxu0 }
 0x128   : > { %v1434_v61 = vpop.f32.mrb[0].mxu1  ;;  %v1371_v62 = vpop.f32.mrb[1].mxu0 }
 0x129   : > { %v1372_v63 = vadd.f32 %v1371_v62, %v1370_v60  ;;  %v1435_v0 = vpop.f32.mrb[1].mxu1  ;;  %v1373_v1 = vpop.f32.mrb[2].mxu0 }
 0x12a   : > { %v1436_v2 = vadd.f32 %v1435_v0, %v1434_v61  ;;  %v1437_v3 = vpop.f32.mrb[2].mxu1  ;;  %v1374_v4 = vpop.f32.mrb[3].mxu0  ;;  %v535_v0 = vld [vmem:[#allocation2 + $0x38] sm:$0xff] }
 0x12b   : > { %v1375_v6 = vadd.f32 %v1374_v4, %v1373_v1  ;;  %v1438_v7 = vpop.f32.mrb[3].mxu1 }
 0x12c   : > { %v932_v8 = vadd.f32 %v1436_v2, %v1372_v63  ;;  %v1439_v9 = vadd.f32 %v1438_v7, %v1437_v3 }
 0x12e   : > { %v994_v11 = vadd.f32 %v932_v8, %v528_v5  ;;  %v935_v12 = vadd.f32 %v1439_v9, %v1375_v6 }
 0x12f   : > { %v1376_v13 = vpop.f32.mrb[4].mxu0 }
 0x130   : > { %1010 = vst [vmem:[#allocation2] sm:$0xff] %v994_v11  ;;  %v995_v14 = vadd.f32 %v935_v12, %v529_v10  ;;  %v1440_v15 = vpop.f32.mrb[4].mxu1  ;;  %v1377_v16 = vpop.f32.mrb[5].mxu0 }
 0x131   : > { %v1378_v17 = vadd.f32 %v1377_v16, %v1376_v13  ;;  %v1441_v18 = vpop.f32.mrb[5].mxu1  ;;  %v1379_v19 = vpop.f32.mrb[6].mxu0  ;;  %v536_v13 = vld [vmem:[#allocation2 + $0x40] sm:$0xff] }
 0x132   : > { %1011 = vst [vmem:[#allocation2 + $0x8] sm:$0xff] %v995_v14  ;;  %v1442_v20 = vadd.f32 %v1441_v18, %v1440_v15  ;;  %v1443_v21 = vpop.f32.mrb[6].mxu1  ;;  %v1380_v22 = vpop.f32.mrb[7].mxu0  ;;  %v537_v18 = vld [vmem:[#allocation2 + $0x48] sm:$0xff] }
 0x133   : > { %v1381_v24 = vadd.f32 %v1380_v22, %v1379_v19  ;;  %v1444_v25 = vpop.f32.mrb[7].mxu1 }
 0x134   : > { %v940_v26 = vadd.f32 %v1442_v20, %v1378_v17  ;;  %v1445_v27 = vadd.f32 %v1444_v25, %v1443_v21 }
 0x136   : > { %v996_v29 = vadd.f32 %v940_v26, %v530_v23  ;;  %v943_v30 = vadd.f32 %v1445_v27, %v1381_v24 }
 0x137   : > { %v1382_v31 = vpop.f32.mrb[8].mxu0 }
 0x138   : > { %1012 = vst [vmem:[#allocation2 + $0x10] sm:$0xff] %v996_v29  ;;  %v997_v32 = vadd.f32 %v943_v30, %v531_v28  ;;  %v1446_v33 = vpop.f32.mrb[8].mxu1  ;;  %v1383_v34 = vpop.f32.mrb[9].mxu0 }
 0x139   : > { %v1384_v35 = vadd.f32 %v1383_v34, %v1382_v31  ;;  %v1447_v36 = vpop.f32.mrb[9].mxu1  ;;  %v1385_v37 = vpop.f32.mrb[10].mxu0  ;;  %v538_v31 = vld [vmem:[#allocation2 + $0x50] sm:$0xff] }
 0x13a   : > { %1013 = vst [vmem:[#allocation2 + $0x18] sm:$0xff] %v997_v32  ;;  %v1448_v38 = vadd.f32 %v1447_v36, %v1446_v33  ;;  %v1449_v39 = vpop.f32.mrb[10].mxu1  ;;  %v1386_v40 = vpop.f32.mrb[11].mxu0  ;;  %v539_v36 = vld [vmem:[#allocation2 + $0x58] sm:$0xff] }
 0x13b   : > { %v1387_v42 = vadd.f32 %v1386_v40, %v1385_v37  ;;  %v1450_v43 = vpop.f32.mrb[11].mxu1 }
 0x13c   : > { %v948_v44 = vadd.f32 %v1448_v38, %v1384_v35  ;;  %v1451_v45 = vadd.f32 %v1450_v43, %v1449_v39 }
 0x13e   : > { %v998_v47 = vadd.f32 %v948_v44, %v532_v41  ;;  %v951_v48 = vadd.f32 %v1451_v45, %v1387_v42 }
 0x13f   : > { %v1388_v49 = vpop.f32.mrb[12].mxu0 }
 0x140   : > { %1014 = vst [vmem:[#allocation2 + $0x20] sm:$0xff] %v998_v47  ;;  %v999_v50 = vadd.f32 %v951_v48, %v533_v46  ;;  %v1452_v51 = vpop.f32.mrb[12].mxu1  ;;  %v1389_v52 = vpop.f32.mrb[13].mxu0 }
 0x141   : > { %v1390_v53 = vadd.f32 %v1389_v52, %v1388_v49  ;;  %v1453_v54 = vpop.f32.mrb[13].mxu1  ;;  %v1391_v55 = vpop.f32.mrb[14].mxu0  ;;  %v540_v49 = vld [vmem:[#allocation2 + $0x60] sm:$0xff] }
 0x142   : > { %1015 = vst [vmem:[#allocation2 + $0x28] sm:$0xff] %v999_v50  ;;  %v1454_v56 = vadd.f32 %v1453_v54, %v1452_v51  ;;  %v1455_v57 = vpop.f32.mrb[14].mxu1  ;;  %v1392_v58 = vpop.f32.mrb[15].mxu0  ;;  %v541_v54 = vld [vmem:[#allocation2 + $0x68] sm:$0xff] }
 0x143   : > { %v1393_v60 = vadd.f32 %v1392_v58, %v1391_v55  ;;  %v1456_v61 = vpop.f32.mrb[15].mxu1 }
 0x144   : > { %v956_v62 = vadd.f32 %v1454_v56, %v1390_v53  ;;  %v1457_v63 = vadd.f32 %v1456_v61, %v1455_v57 }
 0x146   : > { %v1000_v1 = vadd.f32 %v956_v62, %v534_v59  ;;  %v959_v2 = vadd.f32 %v1457_v63, %v1393_v60 }
 0x147   : > { %v1394_v3 = vpop.f32.mrb[16].mxu0 }
 0x148   : > { %1016 = vst [vmem:[#allocation2 + $0x30] sm:$0xff] %v1000_v1  ;;  %v1001_v4 = vadd.f32 %v959_v2, %v535_v0  ;;  %v1458_v5 = vpop.f32.mrb[16].mxu1  ;;  %v1395_v6 = vpop.f32.mrb[17].mxu0 }
 0x149   : > { %v1396_v7 = vadd.f32 %v1395_v6, %v1394_v3  ;;  %v1459_v8 = vpop.f32.mrb[17].mxu1  ;;  %v1397_v9 = vpop.f32.mrb[18].mxu0  ;;  %v542_v3 = vld [vmem:[#allocation2 + $0x70] sm:$0xff] }
 0x14a   : > { %1017 = vst [vmem:[#allocation2 + $0x38] sm:$0xff] %v1001_v4  ;;  %v1460_v10 = vadd.f32 %v1459_v8, %v1458_v5  ;;  %v1461_v11 = vpop.f32.mrb[18].mxu1  ;;  %v1398_v12 = vpop.f32.mrb[19].mxu0  ;;  %v543_v8 = vld [vmem:[#allocation2 + $0x78] sm:$0xff] }
 0x14b   : > { %v1399_v14 = vadd.f32 %v1398_v12, %v1397_v9  ;;  %v1462_v15 = vpop.f32.mrb[19].mxu1  ;;  %v1029_v12 = vld [vmem:[#allocation2] sm:$0xff] (%p1616_p4) }
 0x14c   : > { %v964_v16 = vadd.f32 %v1460_v10, %v1396_v7  ;;  %v1463_v17 = vadd.f32 %v1462_v15, %v1461_v11 }
 0x14e   : > { %v1002_v19 = vadd.f32 %v964_v16, %v536_v13  ;;  %v967_v20 = vadd.f32 %v1463_v17, %v1399_v14  ;;  %v1350_v13 = vld [vmem:[%s1812_s3] ss:$0 sm:$0xff] (%p1616_p4)  ;;  %v1030_v16 = vld [vmem:[#allocation2 + $0x8] sm:$0xff] (%p1616_p4)  ;;  %v1031_v17 = vld [vmem:[#allocation2 + $0x10] sm:$0xff] (%p1616_p4) }
 0x14f   : > { %v1400_v21 = vpop.f32.mrb[20].mxu0  ;;  %v1351_v14 = vld [vmem:[%s1813_s4] ss:$0 sm:$0xff] (%p1616_p4)  ;;  %v1052_v15 = vmul.f32 (%p1616_p4), %v1350_v13, %v1029_v12 }
 0x150   : > { %1018 = vst [vmem:[#allocation2 + $0x40] sm:$0xff] %v1002_v19  ;;  %v1003_v22 = vadd.f32 %v967_v20, %v537_v18  ;;  %v1464_v23 = vpop.f32.mrb[20].mxu1  ;;  %v1401_v24 = vpop.f32.mrb[21].mxu0  ;;  %v1032_v18 = vld [vmem:[#allocation2 + $0x18] sm:$0xff] (%p1616_p4)  ;;  %v1053_v19 = vmul.f32 (%p1616_p4), %v1350_v13, %v1030_v16  ;;  %v1054_v20 = vmul.f32 (%p1616_p4), %v1350_v13, %v1031_v17 }
 0x151   : > { %v1402_v25 = vadd.f32 %v1401_v24, %v1400_v21  ;;  %v1465_v26 = vpop.f32.mrb[21].mxu1  ;;  %v1403_v27 = vpop.f32.mrb[22].mxu0  ;;  %v1055_v21 = vmul.f32 (%p1616_p4), %v1350_v13, %v1032_v18  ;;  %v1035_v24 = vld [vmem:[#allocation2 + $0x30] sm:$0xff] (%p1616_p4) }
 0x152   : > { %1019 = vst [vmem:[#allocation2 + $0x48] sm:$0xff] %v1003_v22  ;;  %v1466_v28 = vadd.f32 %v1465_v26, %v1464_v23  ;;  %v1467_v29 = vpop.f32.mrb[22].mxu1  ;;  %v1404_v30 = vpop.f32.mrb[23].mxu0  ;;  %v1033_v22 = vld [vmem:[#allocation2 + $0x20] sm:$0xff] (%p1616_p4)  ;;  %v1034_v23 = vld [vmem:[#allocation2 + $0x28] sm:$0xff] (%p1616_p4) }
 0x153   : > { %v1405_v32 = vadd.f32 %v1404_v30, %v1403_v27  ;;  %v1468_v33 = vpop.f32.mrb[23].mxu1  ;;  %v1056_v26 = vmul.f32 (%p1616_p4), %v1350_v13, %v1033_v22  ;;  %v1057_v27 = vmul.f32 (%p1616_p4), %v1350_v13, %v1034_v23 }
 0x154   : > { %v972_v34 = vadd.f32 %v1466_v28, %v1402_v25  ;;  %v1469_v35 = vadd.f32 %v1468_v33, %v1467_v29  ;;  %v1075_v25 = vadd.f32 (%p1616_p4), %v1351_v14, %v1052_v15  ;;  %v1058_v28 = vmul.f32 (%p1616_p4), %v1350_v13, %v1035_v24  ;;  %v1036_v29 = vld [vmem:[#allocation2 + $0x38] sm:$0xff] (%p1616_p4) }
 0x155   : > { %v1077_v33 = vadd.f32 (%p1616_p4), %v1351_v14, %v1054_v20 }
 0x156   : > { %v1004_v37 = vadd.f32 %v972_v34, %v538_v31  ;;  %v975_v38 = vadd.f32 %v1469_v35, %v1405_v32  ;;  %v1076_v32 = vadd.f32 (%p1616_p4), %v1351_v14, %v1053_v19  ;;  %v1078_v34 = vadd.f32 (%p1616_p4), %v1351_v14, %v1055_v21  ;;  %1091 = vst [vmem:[%s1612_s18] sm:$0xff] (%p1616_p4), %v1075_v25 }
 0x157   : > { %v1406_v39 = vpop.f32.mrb[24].mxu0  ;;  %v1037_v30 = vld [vmem:[#allocation2 + $0x40] sm:$0xff] (%p1616_p4)  ;;  %v1059_v35 = vmul.f32 (%p1616_p4), %v1350_v13, %v1036_v29  ;;  %1093 = vst [vmem:[%s1612_s18 + $0x10] sm:$0xff] (%p1616_p4), %v1077_v33 }
 0x158   : > { %1020 = vst [vmem:[#allocation2 + $0x50] sm:$0xff] %v1004_v37  ;;  %v1005_v40 = vadd.f32 %v975_v38, %v539_v36  ;;  %v1470_v41 = vpop.f32.mrb[24].mxu1  ;;  %v1407_v42 = vpop.f32.mrb[25].mxu0  ;;  %1092 = vst [vmem:[%s1612_s18 + $0x8] sm:$0xff] (%p1616_p4), %v1076_v32 }
 0x159   : > { %v1408_v43 = vadd.f32 %v1407_v42, %v1406_v39  ;;  %v1471_v44 = vpop.f32.mrb[25].mxu1  ;;  %v1409_v45 = vpop.f32.mrb[26].mxu0  ;;  %v1038_v31 = vld [vmem:[#allocation2 + $0x48] sm:$0xff] (%p1616_p4)  ;;  %v1079_v39 = vadd.f32 (%p1616_p4), %v1351_v14, %v1056_v26  ;;  %v1060_v42 = vmul.f32 (%p1616_p4), %v1350_v13, %v1037_v30  ;;  %1094 = vst [vmem:[%s1612_s18 + $0x18] sm:$0xff] (%p1616_p4), %v1078_v34 }
 0x15a   : > { %1021 = vst [vmem:[#allocation2 + $0x58] sm:$0xff] %v1005_v40  ;;  %v1472_v46 = vadd.f32 %v1471_v44, %v1470_v41  ;;  %v1473_v47 = vpop.f32.mrb[26].mxu1  ;;  %v1410_v48 = vpop.f32.mrb[27].mxu0  ;;  %v1080_v40 = vadd.f32 (%p1616_p4), %v1351_v14, %v1057_v27  ;;  %v1081_v41 = vadd.f32 (%p1616_p4), %v1351_v14, %v1058_v28 }
 0x15b   : > { %v1411_v50 = vadd.f32 %v1410_v48, %v1409_v45  ;;  %v1474_v51 = vpop.f32.mrb[27].mxu1  ;;  %1095 = vst [vmem:[%s1612_s18 + $0x20] sm:$0xff] (%p1616_p4), %v1079_v39 }
 0x15c   : > { %v980_v52 = vadd.f32 %v1472_v46, %v1408_v43  ;;  %v1475_v53 = vadd.f32 %v1474_v51, %v1473_v47  ;;  %v1082_v46 = vadd.f32 (%p1616_p4), %v1351_v14, %v1059_v35  ;;  %v1061_v47 = vmul.f32 (%p1616_p4), %v1350_v13, %v1038_v31  ;;  %1096 = vst [vmem:[%s1612_s18 + $0x28] sm:$0xff] (%p1616_p4), %v1080_v40 }
 0x15d   : > { %1097 = vst [vmem:[%s1612_s18 + $0x30] sm:$0xff] (%p1616_p4), %v1081_v41 }
 0x15e   : > { %v1006_v55 = vadd.f32 %v980_v52, %v540_v49  ;;  %v983_v56 = vadd.f32 %v1475_v53, %v1411_v50  ;;  %v1083_v50 = vadd.f32 (%p1616_p4), %v1351_v14, %v1060_v42  ;;  %1098 = vst [vmem:[%s1612_s18 + $0x38] sm:$0xff] (%p1616_p4), %v1082_v46 }
 0x15f   : > { %v1412_v57 = vpop.f32.mrb[28].mxu0  ;;  %v1039_v36 = vld [vmem:[#allocation2 + $0x50] sm:$0xff] (%p1616_p4) }
 0x160   : > { %1022 = vst [vmem:[#allocation2 + $0x60] sm:$0xff] %v1006_v55  ;;  %v1007_v58 = vadd.f32 %v983_v56, %v541_v54  ;;  %v1476_v59 = vpop.f32.mrb[28].mxu1  ;;  %v1413_v60 = vpop.f32.mrb[29].mxu0  ;;  %v1062_v48 = vmul.f32 (%p1616_p4), %v1350_v13, %v1039_v36  ;;  %v1084_v54 = vadd.f32 (%p1616_p4), %v1351_v14, %v1061_v47  ;;  %1099 = vst [vmem:[%s1612_s18 + $0x40] sm:$0xff] (%p1616_p4), %v1083_v50 }
 0x161   : > { %v1414_v61 = vadd.f32 %v1413_v60, %v1412_v57  ;;  %v1477_v62 = vpop.f32.mrb[29].mxu1  ;;  %v1415_v63 = vpop.f32.mrb[30].mxu0  ;;  %v1040_v37 = vld [vmem:[#allocation2 + $0x58] sm:$0xff] (%p1616_p4) }
 0x162   : > { %1023 = vst [vmem:[#allocation2 + $0x68] sm:$0xff] %v1007_v58  ;;  %v1478_v0 = vadd.f32 %v1477_v62, %v1476_v59  ;;  %v1479_v1 = vpop.f32.mrb[30].mxu1  ;;  %v1416_v2 = vpop.f32.mrb[31].mxu0  ;;  %v1063_v49 = vmul.f32 (%p1616_p4), %v1350_v13, %v1040_v37  ;;  %v1085_v55 = vadd.f32 (%p1616_p4), %v1351_v14, %v1062_v48  ;;  %1100 = vst [vmem:[%s1612_s18 + $0x48] sm:$0xff] (%p1616_p4), %v1084_v54 }
 0x163   : > { %v1417_v4 = vadd.f32 %v1416_v2, %v1415_v63  ;;  %v1480_v5 = vpop.f32.mrb[31].mxu1 }
 0x164   : > { %v988_v6 = vadd.f32 %v1478_v0, %v1414_v61  ;;  %v1481_v7 = vadd.f32 %v1480_v5, %v1479_v1  ;;  %1028 = sbr.rel (!%p1616_p4) target bundleno = 375 (0x177), region = 44  ;;  %v1086_v56 = vadd.f32 (%p1616_p4), %v1351_v14, %v1063_v49  ;;  %1101 = vst [vmem:[%s1612_s18 + $0x50] sm:$0xff] (%p1616_p4), %v1085_v55 }
 0x166   : > { %v1008_v9 = vadd.f32 %v988_v6, %v542_v3  ;;  %v991_v10 = vadd.f32 %v1481_v7, %v1417_v4  ;;  %1102 = vst [vmem:[%s1612_s18 + $0x58] sm:$0xff] (%p1616_p4), %v1086_v56 }
 0x167   : > { %v1041_v38 = vld [vmem:[#allocation2 + $0x60] sm:$0xff] (%p1616_p4) }
 0x168   : > { %1024 = vst [vmem:[#allocation2 + $0x70] sm:$0xff] %v1008_v9  ;;  %v1009_v11 = vadd.f32 %v991_v10, %v543_v8  ;;  %v1064_v51 = vmul.f32 (%p1616_p4), %v1350_v13, %v1041_v38 }
 0x169   : > { %v1042_v43 = vld [vmem:[#allocation2 + $0x68] sm:$0xff] (%p1616_p4) }
 0x16a   : > { %1025 = vst [vmem:[#allocation2 + $0x78] sm:$0xff] %v1009_v11  ;;  %v1065_v52 = vmul.f32 (%p1616_p4), %v1350_v13, %v1042_v43  ;;  %v1087_v58 = vadd.f32 (%p1616_p4), %v1351_v14, %v1064_v51 }
 0x16c   : > { %v1088_v59 = vadd.f32 %v1351_v14, %v1065_v52  ;;  %1103 = vst [vmem:[%s1612_s18 + $0x60] sm:$0xff] %v1087_v58 }
 0x16e   : > { %1104 = vst [vmem:[%s1612_s18 + $0x68] sm:$0xff] %v1088_v59 }
 0x16f   : > { %v1043_v44 = vld [vmem:[#allocation2 + $0x70] sm:$0xff] }
 0x170   : > { %v1066_v53 = vmul.f32 %v1350_v13, %v1043_v44 }
 0x171   : > { %v1044_v45 = vld [vmem:[#allocation2 + $0x78] sm:$0xff] }
 0x172   : > { %v1067_v57 = vmul.f32 %v1350_v13, %v1044_v45  ;;  %v1089_v60 = vadd.f32 %v1351_v14, %v1066_v53 }
 0x174   : > { %v1090_v61 = vadd.f32 %v1351_v14, %v1067_v57  ;;  %1105 = vst [vmem:[%s1612_s18 + $0x70] sm:$0xff] %v1089_v60 }
 0x176   : > { %1106 = vst [vmem:[%s1612_s18 + $0x78] sm:$0xff] %v1090_v61 }
 0x177 PF: > { %s21_s23 = sadd.s32 1, %s1545_s23  }
 0x178   : > { %p18_p5 = scmp.ge.s32.totalorder %s21_s23, 6  }
 0x17a   :  { %20 = sbr.rel (!%p18_p5) target bundleno = 16 (0x10), region = 77 }

</bundles_post_ra>
